<compile_context>
chip_gen: v5e
topology: v5e:2x2
jax: 0.10.0
libtpu: 0.0.40
codegen_flags: <defaults>
</compile_context>

<pallas_src>
import jax
import jax.numpy as jnp
from jax.experimental import pallas as pl
from jax.experimental.pallas import tpu as pltpu


def ann_kernel(x_ref, w1_ref, b1_ref, w2_ref, b2_ref, w3_ref, b3_ref, o_ref):
    # layer1 + sigmoid   (MXU matmul with f32 accumulation; sigmoid on EUP)
    h1 = jnp.dot(x_ref[...], w1_ref[...], preferred_element_type=jnp.float32)
    h1 = jax.nn.sigmoid(h1 + b1_ref[...])
    # layer2 + sigmoid   (tiny 3x3 matmul — filler under the x DMA)
    h2 = jnp.dot(h1, w2_ref[...], preferred_element_type=jnp.float32)
    h2 = jax.nn.sigmoid(h2 + b2_ref[...])
    # layer3 logits — w3/b3 arrive padded to 128 lanes; padded columns carry a
    # -1e30 bias so they contribute exp(...) == 0 to the softmax below.
    logits = jnp.dot(h2, w3_ref[...], preferred_element_type=jnp.float32)
    logits = logits + b3_ref[...]
    # numerically stable softmax over the feature (lane) axis
    m = jnp.max(logits, axis=1, keepdims=True)
    e = jnp.exp(logits - m)
    denom = jnp.sum(e, axis=1, keepdims=True)
    o_ref[...] = (e / denom).astype(o_ref.dtype)


def _round_up(n, m):
    return ((n + m - 1) // m) * m


def three_layer_ann(x, w1, b1, w2, b2, w3, b3, *,
                    block_b=512, lane_pad=128, compute_dtype=jnp.float32):
    """Forward pass. x: (B, in_size) f32. Weights are (in, out) = torch weight.T."""
    B, in_size = x.shape
    out_size = w3.shape[1]
    f32 = jnp.float32

    # ---- lane-dense output: pad layer3 to `lane_pad` output columns ---------
    w3p = jnp.zeros((w3.shape[0], lane_pad), f32).at[:, :out_size].set(w3.astype(f32))
    b3p = jnp.full((1, lane_pad), -1e30, f32).at[:, :out_size].set(
        b3.reshape(1, -1).astype(f32))

    # ---- batch tiling --------------------------------------------------------
    tb = min(block_b, _round_up(B, 8))      # batch tile (multiple of 8)
    Bp = _round_up(B, tb)                   # padded batch
    if Bp != B:
        x = jnp.pad(x, ((0, Bp - B), (0, 0)))
    grid = (Bp // tb,)

    # Optional narrow-precision x / w1 (kernel is HBM-bound on x); the matmul
    # still accumulates in f32 and all VPU/EUP work stays f32 (v5e-safe).
    if compute_dtype != f32:
        x = x.astype(compute_dtype)
        w1 = w1.astype(compute_dtype)

    b1 = b1.reshape(1, -1).astype(f32)
    b2 = b2.reshape(1, -1).astype(f32)

    # Weights/biases: full-array blocks with a constant index_map -> loaded
    # once, resident in VMEM for the whole grid.
    const = lambda a: pl.BlockSpec(a.shape, lambda i: (0,) * a.ndim)

    out = pl.pallas_call(
        ann_kernel,
        out_shape=jax.ShapeDtypeStruct((Bp, lane_pad), f32),
        grid=grid,
        in_specs=[
            pl.BlockSpec((tb, in_size), lambda i: (i, 0)),    # x: streamed tiles
            const(w1), const(b1),
            const(w2), const(b2),
            const(w3p), const(b3p),
        ],
        out_specs=pl.BlockSpec((tb, lane_pad), lambda i: (i, 0)),
        compiler_params=pltpu.CompilerParams(
            dimension_semantics=("parallel",),        # megacore-shardable on v7x
            vmem_limit_bytes=48 * 1024 * 1024,        # safe for v7x's 64 MiB VMEM
        ),
    )(x, w1, b1, w2, b2, w3p, b3p)

    return out[:B, :out_size]


def init_params(key, in_size=784, out_size=3):
    # Mirrors the PyTorch __init__: weights ~ N(0, 1), biases = 0.
    k1, k2, k3 = jax.random.split(key, 3)
    w1 = jax.random.normal(k1, (in_size, 3), dtype=jnp.float32)   # layer1.weight.T
    b1 = jnp.zeros((1, 3), dtype=jnp.float32)
    w2 = jax.random.normal(k2, (3, 3), dtype=jnp.float32)         # layer2.weight.T
    b2 = jnp.zeros((1, 3), dtype=jnp.float32)
    w3 = jax.random.normal(k3, (3, out_size), dtype=jnp.float32)  # layer3.weight.T
    b3 = jnp.zeros((1, out_size), dtype=jnp.float32)
    return w1, b1, w2, b2, w3, b3


def reference_forward(x, w1, b1, w2, b2, w3, b3):
    h1 = jax.nn.sigmoid(x @ w1 + b1)
    h2 = jax.nn.sigmoid(h1 @ w2 + b2)
    logits = h2 @ w3 + b3
    return jax.nn.softmax(logits, axis=1)


if __name__ == "__main__":
    key = jax.random.PRNGKey(0)
    kx, kp = jax.random.split(key)

    # Ragged batch (not a multiple of 8) to exercise batch padding + the
    # lane-padded output slice; block_b=128 -> grid=(2,) so the pipelined
    # batch grid actually runs more than one step.
    B, in_size, out_size = 250, 784, 3
    x = jax.random.normal(kx, (B, in_size), dtype=jnp.float32)
    params = init_params(kp, in_size=in_size, out_size=out_size)

    out = three_layer_ann(x, *params, block_b=128)
    out = jax.block_until_ready(out)

    ref = reference_forward(x, *params)
    assert out.shape == (B, out_size)
    assert jnp.allclose(out, ref, atol=1e-5, rtol=1e-5), "mismatch vs reference"
    assert jnp.allclose(jnp.sum(out, axis=1), jnp.ones((B,)), atol=1e-5)

    print("KERNEL_OK")
</pallas_src>

<mosaic_0001>
module attributes {stable_mosaic.version = 11 : i64} {
  func.func @ann_kernel(%arg0: i32, %arg1: memref<128x784xf32, #tpu.memory_space<vmem>>, %arg2: memref<784x3xf32, #tpu.memory_space<vmem>>, %arg3: memref<1x3xf32, #tpu.memory_space<vmem>>, %arg4: memref<3x3xf32, #tpu.memory_space<vmem>>, %arg5: memref<1x3xf32, #tpu.memory_space<vmem>>, %arg6: memref<3x128xf32, #tpu.memory_space<vmem>>, %arg7: memref<1x128xf32, #tpu.memory_space<vmem>>, %arg8: memref<128x128xf32, #tpu.memory_space<vmem>>) attributes {dimension_semantics = [#tpu.dimension_semantics<parallel>], iteration_bounds = array<i64: 2>, scalar_prefetch = 0 : i64, scratch_operands = 0 : i64, tpu.core_type = #tpu.core_type<tc>, window_params = [{transform_indices = @transform_0, window_bounds = array<i64: 128, 784>}, {pipeline_mode = #tpu.pipeline_mode<synchronous>, transform_indices = @transform_1, window_bounds = array<i64: 784, 3>}, {pipeline_mode = #tpu.pipeline_mode<synchronous>, transform_indices = @transform_2, window_bounds = array<i64: 1, 3>}, {pipeline_mode = #tpu.pipeline_mode<synchronous>, transform_indices = @transform_3, window_bounds = array<i64: 3, 3>}, {pipeline_mode = #tpu.pipeline_mode<synchronous>, transform_indices = @transform_4, window_bounds = array<i64: 1, 3>}, {pipeline_mode = #tpu.pipeline_mode<synchronous>, transform_indices = @transform_5, window_bounds = array<i64: 3, 128>}, {pipeline_mode = #tpu.pipeline_mode<synchronous>, transform_indices = @transform_6, window_bounds = array<i64: 1, 128>}, {transform_indices = @transform_7, window_bounds = array<i64: 128, 128>}]} {
    %c0 = arith.constant 0 : index
    %c0_0 = arith.constant 0 : index
    %0 = vector.load %arg1[%c0, %c0_0] : memref<128x784xf32, #tpu.memory_space<vmem>>, vector<128x784xf32>
    %c0_1 = arith.constant 0 : index
    %c0_2 = arith.constant 0 : index
    %1 = vector.load %arg2[%c0_1, %c0_2] : memref<784x3xf32, #tpu.memory_space<vmem>>, vector<784x3xf32>
    %cst = arith.constant dense<0.000000e+00> : vector<128x3xf32>
    %2 = tpu.matmul %0, %1, %cst {dimension_numbers = #tpu.dot_dimension_numbers<[1], [0], [0], [1], [0, 0, 1, 1], [], []>} : vector<128x784xf32>, vector<784x3xf32>, vector<128x3xf32> -> vector<128x3xf32>
    %c0_3 = arith.constant 0 : index
    %c0_4 = arith.constant 0 : index
    %3 = vector.load %arg3[%c0_3, %c0_4] : memref<1x3xf32, #tpu.memory_space<vmem>>, vector<1x3xf32>
    %4 = vector.broadcast %3 : vector<1x3xf32> to vector<128x3xf32>
    %5 = arith.addf %2, %4 : vector<128x3xf32>
    %6 = arith.negf %5 : vector<128x3xf32>
    %7 = math.exp %6 : vector<128x3xf32>
    %cst_5 = arith.constant 1.000000e+00 : f32
    %8 = vector.broadcast %cst_5 : f32 to vector<128x3xf32>
    %9 = arith.addf %8, %7 : vector<128x3xf32>
    %10 = arith.divf %8, %9 : vector<128x3xf32>
    %c0_6 = arith.constant 0 : index
    %c0_7 = arith.constant 0 : index
    %11 = vector.load %arg4[%c0_6, %c0_7] : memref<3x3xf32, #tpu.memory_space<vmem>>, vector<3x3xf32>
    %cst_8 = arith.constant dense<0.000000e+00> : vector<128x3xf32>
    %12 = tpu.matmul %10, %11, %cst_8 {dimension_numbers = #tpu.dot_dimension_numbers<[1], [0], [0], [1], [0, 0, 1, 1], [], []>} : vector<128x3xf32>, vector<3x3xf32>, vector<128x3xf32> -> vector<128x3xf32>
    %c0_9 = arith.constant 0 : index
    %c0_10 = arith.constant 0 : index
    %13 = vector.load %arg5[%c0_9, %c0_10] : memref<1x3xf32, #tpu.memory_space<vmem>>, vector<1x3xf32>
    %14 = vector.broadcast %13 : vector<1x3xf32> to vector<128x3xf32>
    %15 = arith.addf %12, %14 : vector<128x3xf32>
    %16 = arith.negf %15 : vector<128x3xf32>
    %17 = math.exp %16 : vector<128x3xf32>
    %cst_11 = arith.constant 1.000000e+00 : f32
    %18 = vector.broadcast %cst_11 : f32 to vector<128x3xf32>
    %19 = arith.addf %18, %17 : vector<128x3xf32>
    %20 = arith.divf %18, %19 : vector<128x3xf32>
    %c0_12 = arith.constant 0 : index
    %c0_13 = arith.constant 0 : index
    %21 = vector.load %arg6[%c0_12, %c0_13] : memref<3x128xf32, #tpu.memory_space<vmem>>, vector<3x128xf32>
    %cst_14 = arith.constant dense<0.000000e+00> : vector<128x128xf32>
    %22 = tpu.matmul %20, %21, %cst_14 {dimension_numbers = #tpu.dot_dimension_numbers<[1], [0], [0], [1], [0, 0, 1, 1], [], []>} : vector<128x3xf32>, vector<3x128xf32>, vector<128x128xf32> -> vector<128x128xf32>
    %c0_15 = arith.constant 0 : index
    %c0_16 = arith.constant 0 : index
    %23 = vector.load %arg7[%c0_15, %c0_16] : memref<1x128xf32, #tpu.memory_space<vmem>>, vector<1x128xf32>
    %24 = vector.broadcast %23 : vector<1x128xf32> to vector<128x128xf32>
    %25 = arith.addf %22, %24 : vector<128x128xf32>
    %cst_17 = arith.constant dense<0xFF800000> : vector<128xf32>
    %26 = vector.multi_reduction <maximumf>, %25, %cst_17 [1] : vector<128x128xf32> to vector<128xf32>
    %27 = vector.shape_cast %26 : vector<128xf32> to vector<128x1xf32>
    %28 = vector.broadcast %27 : vector<128x1xf32> to vector<128x128xf32>
    %29 = arith.subf %25, %28 : vector<128x128xf32>
    %30 = math.exp %29 : vector<128x128xf32>
    %cst_18 = arith.constant dense<0.000000e+00> : vector<128xf32>
    %31 = vector.multi_reduction <add>, %30, %cst_18 [1] : vector<128x128xf32> to vector<128xf32>
    %32 = vector.shape_cast %31 : vector<128xf32> to vector<128x1xf32>
    %33 = vector.broadcast %32 : vector<128x1xf32> to vector<128x128xf32>
    %34 = arith.divf %30, %33 : vector<128x128xf32>
    %c0_19 = arith.constant 0 : index
    %c0_20 = arith.constant 0 : index
    %35 = vector.load %arg8[%c0_19, %c0_20] : memref<128x128xf32, #tpu.memory_space<vmem>>, vector<128x128xf32>
    tpu.vector_store %arg8[%c0_19, %c0_20], %34 {strides = array<i32>} : memref<128x128xf32, #tpu.memory_space<vmem>>, vector<128x128xf32>,
    return
  }
  func.func @transform_0(%arg0: i32) -> (i32, i32) {
    %c0_i32 = arith.constant 0 : i32
    %c0_i32_0 = arith.constant 0 : i32
    return %arg0, %c0_i32 : i32, i32
  }
  func.func @transform_1(%arg0: i32) -> (i32, i32) {
    %c0_i32 = arith.constant 0 : i32
    %c0_i32_0 = arith.constant 0 : i32
    %c0_i32_1 = arith.constant 0 : i32
    return %c0_i32, %c0_i32_0 : i32, i32
  }
  func.func @transform_2(%arg0: i32) -> (i32, i32) {
    %c0_i32 = arith.constant 0 : i32
    %c0_i32_0 = arith.constant 0 : i32
    %c0_i32_1 = arith.constant 0 : i32
    return %c0_i32, %c0_i32_0 : i32, i32
  }
  func.func @transform_3(%arg0: i32) -> (i32, i32) {
    %c0_i32 = arith.constant 0 : i32
    %c0_i32_0 = arith.constant 0 : i32
    %c0_i32_1 = arith.constant 0 : i32
    return %c0_i32, %c0_i32_0 : i32, i32
  }
  func.func @transform_4(%arg0: i32) -> (i32, i32) {
    %c0_i32 = arith.constant 0 : i32
    %c0_i32_0 = arith.constant 0 : i32
    %c0_i32_1 = arith.constant 0 : i32
    return %c0_i32, %c0_i32_0 : i32, i32
  }
  func.func @transform_5(%arg0: i32) -> (i32, i32) {
    %c0_i32 = arith.constant 0 : i32
    %c0_i32_0 = arith.constant 0 : i32
    %c0_i32_1 = arith.constant 0 : i32
    return %c0_i32, %c0_i32_0 : i32, i32
  }
  func.func @transform_6(%arg0: i32) -> (i32, i32) {
    %c0_i32 = arith.constant 0 : i32
    %c0_i32_0 = arith.constant 0 : i32
    %c0_i32_1 = arith.constant 0 : i32
    return %c0_i32, %c0_i32_0 : i32, i32
  }
  func.func @transform_7(%arg0: i32) -> (i32, i32) {
    %c0_i32 = arith.constant 0 : i32
    %c0_i32_0 = arith.constant 0 : i32
    return %arg0, %c0_i32 : i32, i32
  }
}

</mosaic_0001>

<bundles_post_ra>
// kernel: tpu_custom_call.1
= control target key start
LH: loop header
LB: loop body
LE: loop exit
PB: predicated region body
PF: predicated region fallthrough
CT: control target
= control target key end

     0   :  { %12 = vsyncpa [#allocation3], 0  ;;  %s3669_s0 = inlined_call_operand.vmem [shape: f32[256,784], index: 0, kind: input, shape index: {}]   ;;  %s3670_s1 = inlined_call_operand.vmem [shape: f32[784,3], index: 1, kind: input, shape index: {}]   ;;  %s3671_s2 = inlined_call_operand.vmem [shape: f32[1,3], index: 2, kind: input, shape index: {}]   ;;  %s3672_s3 = inlined_call_operand.vmem [shape: f32[3,3], index: 3, kind: input, shape index: {}]   ;;  %s3673_s4 = inlined_call_operand.vmem [shape: f32[1,3], index: 4, kind: input, shape index: {}]   ;;  %s3674_s5 = inlined_call_operand.vmem [shape: f32[3,128], index: 5, kind: input, shape index: {}]   ;;  %s3675_s6 = inlined_call_operand.vmem [shape: f32[1,128], index: 6, kind: input, shape index: {}]   ;;  %s3676_s7 = inlined_call_operand.hbm [shape: f32[256,128], index: 7, kind: output, shape index: {}]  }
   0x1   :  { %14 = vsyncpa [#allocation3 + $0x1], 0  ;;  %s2785_s24 = smov 0   ;;  %s2787_s25 = smov 0  }
   0x2   :  { %s2789_s26 = smov 0   ;;  %s2791_s27 = smov 0  }
   0x3 LB: > { %s2806_s28 = sadd.s32 4294967295, %s2741_s27   ;;  %s2299_s29 = sadd.s32 4294967294, %s2741_s27   ;;  %s2741_s27 = sphi %s2791_s27, %s3682_s27   ;;  %s2737_s26 = sphi %s2789_s26, %s3681_s26   ;;  %s2733_s25 = sphi %s2787_s25, %s3680_s25   ;;  %s2729_s24 = sphi %s2785_s24, %s3679_s24  }
   0x4   : > { %s2810_s30 = sadd.s32 1, %s2741_s27   ;;  %s179_s8 = sadd.s32 1, %s2737_s26 }
   0x5   : > { %s176_s9 = ssub.s32 %s2741_s27, %s2810_s30  ;;  %p189_p0 = scmp.ne.s32.totalorder %s2737_s26, %s2733_s25 }
   0x6   : > { %p177_p1 = scmp.eq.s32.totalorder %s176_s9, 0  ;;  %p190_p2 = scmp.eq.s32.totalorder %s2806_s28, 1 }
   0x7   : > { %p195_p3 = scmp.ne.s32.totalorder %s2733_s25, %s2729_s24  ;;  %p196_p4 = scmp.eq.s32.totalorder %s2299_s29, 1 }
   0x8   : > { %s2821_s10 = scalar_select %p177_p1, %s2737_s26, %s179_s8  }
   0x9   : > { %p2823_p5 = por %p190_p2, %p189_p0  ;;  %p2827_p6 = por %p196_p4, %p195_p3 }
   0xa   : > { %p2302_p7 = scmp.ge.s32.totalorder %s2741_s27, 1  ;;  %p242_p8 = scmp.lt.s32.totalorder %s2741_s27, 3 }
   0xc   : > { %p243_p9 = pnand %p2302_p7, %p242_p8 }
   0xd   : > { %s2304_s13 = sshll.u32 (!%p243_p9), %s2806_s28, 4  ;;  %s2393_s16 = sshll.u32 (!%p243_p9), %s2806_s28, 7 }
   0xe   : > { %246 = sbr.rel (%p243_p9) target bundleno = 1055 (0x41f), region = 48  ;;  %p276_p10 = scmp.lt.s32.totalorder (!%p243_p9), %s2304_s13, 31 }
   0xf   : > { %s2233_s19 = scalar_lea.hbm (!%p243_p9), %s3676_s7, %s2393_s16  ;;  %s2699_s8 = scalar_lea.hbm (!%p243_p9), %s3676_s7, 256 }
  0x10   : > { %s2236_s28 = sshll.u32 (!%p243_p9), %s2233_s19, 4  ;;  %s2237_s28 = int_to_ptr.hbm [resolvable:$true] %s2236_s28 }
  0x11   : > { %s2693_s21 = sshra.s32 (!%p243_p9), %s2237_s28, 4  ;;  %s2694_s21 = int_to_ptr.hbm [resolvable:$true] %s2693_s21 }
  0x12   : > { %s2695_s22 = scalar_lea.hbm (!%p243_p9), %s2694_s21, 128  ;;  %p2700_p0 = scmp.lt.s32.totalorder (!%p243_p9), %s2694_s21, %s3676_s7 }
  0x13   : > { %v410_v0 = vld [vmem:[%s3670_s1 + $0x78] sm:$0xff]  ;;  %v409_v1 = vld [vmem:[%s3670_s1 + $0x70] sm:$0xff]  ;;  %v408_v2 = vld [vmem:[%s3670_s1 + $0x68] sm:$0xff]  ;;  %s3684_s13 = smov (!%p276_p10, %s2304_s13), 31  ;;  %vm497_vm0 = vcmask 130048   ;;  %vm1359_vm1 = vcmask 1042432   ;;  %p2696_p11 = scmp.ne.s32.totalorder %s2694_s21, %s2695_s22 }
  0x14   : > { %2394 = vmatpush.msra.mxu1 %v410_v0  ;;  %2395 = vmatpush.msra.mxu2 %v410_v0  ;;  %v407_v3 = vld [vmem:[%s3670_s1 + $0x60] sm:$0xff]  ;;  %v406_v4 = vld [vmem:[%s3670_s1 + $0x58] sm:$0xff]  ;;  %v405_v5 = vld [vmem:[%s3670_s1 + $0x50] sm:$0xff]  ;;  %s2442_s9 = smul.u32 56, %s3684_s13  ;;  %vm1310_vm5 = vcmask 23552   ;;  %p2701_p1 = scmp.lt.s32.totalorder %s2699_s8, %s2695_s22 }
  0x15   : > { %2396 = vmatpush.msra.mxu3 %v410_v0  ;;  %546 = vmatpush.msra.mxu0 %v410_v0  ;;  %v404_v6 = vld [vmem:[%s3670_s1 + $0x48] sm:$0xff]  ;;  %v403_v7 = vld [vmem:[%s3670_s1 + $0x40] sm:$0xff]  ;;  %v402_v8 = vld [vmem:[%s3670_s1 + $0x38] sm:$0xff]  ;;  %p2697_p12 = pnand %p2696_p11, %p2823_p5 }
  0x16   : > { %2397 = vmatpush.msra.mxu1 %v409_v1  ;;  %2398 = vmatpush.msra.mxu2 %v409_v1  ;;  %v401_v9 = vld [vmem:[%s3670_s1 + $0x30] sm:$0xff]  ;;  %v400_v10 = vld [vmem:[%s3670_s1 + $0x28] sm:$0xff]  ;;  %v399_v11 = vld [vmem:[%s3670_s1 + $0x20] sm:$0xff]  ;;  %s2882_s20 = scalar_lea.vmem %s3669_s0, %s2442_s9  ;;  %s272_s9 = sand.u32 1, %s2733_s25  }
  0x17   : > { %2399 = vmatpush.msra.mxu3 %v409_v1  ;;  %547 = vmatpush.msra.mxu0 %v409_v1  ;;  %v398_v12 = vld [vmem:[%s3670_s1 + $0x18] sm:$0xff]  ;;  %v397_v13 = vld [vmem:[%s3670_s1 + $0x10] sm:$0xff]  ;;  %v396_v14 = vld [vmem:[%s3670_s1 + $0x8] sm:$0xff]  ;;  %s2303_s14 = sshll.u32 %s272_s9, 7  ;;  %p2698_p13 = pneg %p2697_p12 }
  0x18   : > { %2400 = vmatpush.msra.mxu1 %v408_v2  ;;  %2401 = vmatpush.msra.mxu2 %v408_v2  ;;  %v395_v15 = vld [vmem:[%s3670_s1] sm:$0xff]  ;;  %v442_v18 = vld [vmem:[%s3670_s1 + $0x178] sm:$0xff]  ;;  %v441_v21 = vld [vmem:[%s3670_s1 + $0x170] sm:$0xff]  ;;  %s3602_s15 = scalar_lea.vmem [#allocation2], %s2303_s14  ;;  %p2702_p2 = por %p2701_p1, %p2700_p0 }
  0x19   : > { %2402 = vmatpush.msra.mxu3 %v408_v2  ;;  %548 = vmatpush.msra.mxu0 %v408_v2  ;;  %v311_v16 = vld [vmem:[%s2882_s20 + $0xe0] sm:$0xff]  ;;  %v426_v19 = vld [vmem:[%s3670_s1 + $0xf8] sm:$0xff]  ;;  %v425_v23 = vld [vmem:[%s3670_s1 + $0xf0] sm:$0xff]  ;;  %s2234_s13 = sshll.u32 %s3602_s15, 4  ;;  %s2235_s13 = int_to_ptr.vmem [resolvable:$true] %s2234_s13 }
  0x1a   : > { %2403 = vmatpush.msra.mxu1 %v407_v3  ;;  %2404 = vmatpush.msra.mxu2 %v407_v3  ;;  %v339_v17 = vld [vmem:[%s2882_s20 + $0x1c0] sm:$0xff]  ;;  %v458_v22 = vld [vmem:[%s3670_s1 + $0x1f8] sm:$0xff]  ;;  %v440_v24 = vld [vmem:[%s3670_s1 + $0x168] sm:$0xff]  ;;  %p2703_p3 = pnand %p2702_p2, %p2698_p13 }
  0x1b   : > { %2405 = vmatpush.msra.mxu3 %v407_v3  ;;  %549 = vmatpush.msra.mxu0 %v407_v3  ;;  %v367_v20 = vld [vmem:[%s2882_s20 + $0x2a0] sm:$0xff]  ;;  %v457_v25 = vld [vmem:[%s3670_s1 + $0x1f0] sm:$0xff]  ;;  %v424_v26 = vld [vmem:[%s3670_s1 + $0xe8] sm:$0xff] }
  0x1c   : > { %2406 = vmatpush.msra.mxu1 %v406_v4  ;;  %2407 = vmatpush.msra.mxu2 %v406_v4  ;;  %v283_v27 = vld [vmem:[%s2882_s20] sm:$0xff]  ;;  %v456_v29 = vld [vmem:[%s3670_s1 + $0x1e8] sm:$0xff]  ;;  %v346_v31 = vld [vmem:[%s2882_s20 + $0x1f8] sm:$0xff] }
  0x1d   : > { %2408 = vmatpush.msra.mxu3 %v406_v4  ;;  %550 = vmatpush.msra.mxu0 %v406_v4  ;;  %v439_v28 = vld [vmem:[%s3670_s1 + $0x160] sm:$0xff]  ;;  %v318_v32 = vld [vmem:[%s2882_s20 + $0x118] sm:$0xff]  ;;  %v437_v37 = vld [vmem:[%s3670_s1 + $0x150] sm:$0xff] }
  0x1e   : > { %2409 = vmatpush.msra.mxu1 %v405_v5  ;;  %2410 = vmatpush.msra.mxu2 %v405_v5  ;;  %v423_v30 = vld [vmem:[%s3670_s1 + $0xe0] sm:$0xff]  ;;  %v438_v33 = vld [vmem:[%s3670_s1 + $0x158] sm:$0xff]  ;;  %v421_v38 = vld [vmem:[%s3670_s1 + $0xd0] sm:$0xff] }
  0x1f   : > { %2411 = vmatpush.msra.mxu3 %v405_v5  ;;  %551 = vmatpush.msra.mxu0 %v405_v5  ;;  %v422_v34 = vld [vmem:[%s3670_s1 + $0xd8] sm:$0xff]  ;;  %v455_v35 = vld [vmem:[%s3670_s1 + $0x1e0] sm:$0xff]  ;;  %v436_v41 = vld [vmem:[%s3670_s1 + $0x148] sm:$0xff] }
  0x20   : > { %2412 = vmatpush.msra.mxu1 %v404_v6  ;;  %2413 = vmatpush.msra.mxu2 %v404_v6  ;;  %v374_v36 = vld [vmem:[%s2882_s20 + $0x2d8] sm:$0xff]  ;;  %v420_v42 = vld [vmem:[%s3670_s1 + $0xc8] sm:$0xff]  ;;  %v453_v43 = vld [vmem:[%s3670_s1 + $0x1d0] sm:$0xff] }
  0x21   : > { %2414 = vmatpush.msra.mxu3 %v404_v6  ;;  %552 = vmatpush.msra.mxu0 %v404_v6  ;;  %v454_v39 = vld [vmem:[%s3670_s1 + $0x1d8] sm:$0xff]  ;;  %v473_v44 = vld [vmem:[%s3670_s1 + $0x270] sm:$0xff]  ;;  %v435_v45 = vld [vmem:[%s3670_s1 + $0x140] sm:$0xff] }
  0x22   : > { %2415 = vmatpush.msra.mxu1 %v403_v7  ;;  %2416 = vmatpush.msra.mxu2 %v403_v7  ;;  %v474_v40 = vld [vmem:[%s3670_s1 + $0x278] sm:$0xff]  ;;  %v419_v46 = vld [vmem:[%s3670_s1 + $0xc0] sm:$0xff]  ;;  %v452_v47 = vld [vmem:[%s3670_s1 + $0x1c8] sm:$0xff] }
  0x23   : > { %2417 = vmatpush.msra.mxu3 %v403_v7  ;;  %553 = vmatpush.msra.mxu0 %v403_v7  ;;  %v472_v48 = vld [vmem:[%s3670_s1 + $0x268] sm:$0xff]  ;;  %v325_v49 = vld [vmem:[%s2882_s20 + $0x150] sm:$0xff]  ;;  %v418_v51 = vld [vmem:[%s3670_s1 + $0xb8] sm:$0xff] }
  0x24   : > { %2418 = vmatpush.msra.mxu1 %v402_v8  ;;  %2419 = vmatpush.msra.mxu2 %v402_v8  ;;  %v353_v50 = vld [vmem:[%s2882_s20 + $0x230] sm:$0xff]  ;;  %v434_v52 = vld [vmem:[%s3670_s1 + $0x138] sm:$0xff]  ;;  %v451_v53 = vld [vmem:[%s3670_s1 + $0x1c0] sm:$0xff] }
  0x25   : > { %2420 = vmatpush.msra.mxu3 %v402_v8  ;;  %554 = vmatpush.msra.mxu0 %v402_v8  ;;  %v471_v54 = vld [vmem:[%s3670_s1 + $0x260] sm:$0xff]  ;;  %v381_v55 = vld [vmem:[%s2882_s20 + $0x310] sm:$0xff]  ;;  %v290_v56 = vld [vmem:[%s2882_s20 + $0x38] sm:$0xff] }
  0x26   : > { %2421 = vmatpush.msra.mxu1 %v401_v9  ;;  %2422 = vmatpush.msra.mxu2 %v401_v9  ;;  %v433_v57 = vld [vmem:[%s3670_s1 + $0x130] sm:$0xff]  ;;  %v450_v59 = vld [vmem:[%s3670_s1 + $0x1b8] sm:$0xff]  ;;  %v432_v61 = vld [vmem:[%s3670_s1 + $0x128] sm:$0xff] }
  0x27   : > { %2423 = vmatpush.msra.mxu3 %v401_v9  ;;  %555 = vmatpush.msra.mxu0 %v401_v9  ;;  %v417_v58 = vld [vmem:[%s3670_s1 + $0xb0] sm:$0xff]  ;;  %v470_v60 = vld [vmem:[%s3670_s1 + $0x258] sm:$0xff]  ;;  %v416_v62 = vld [vmem:[%s3670_s1 + $0xa8] sm:$0xff] }
  0x28   : > { %2424 = vmatpush.msra.mxu1 %v400_v10  ;;  %2425 = vmatpush.msra.mxu2 %v400_v10  ;;  %v449_v63 = vld [vmem:[%s3670_s1 + $0x1b0] sm:$0xff]  ;;  %v431_v1 = vld [vmem:[%s3670_s1 + $0x120] sm:$0xff]  ;;  %v448_v3 = vld [vmem:[%s3670_s1 + $0x1a8] sm:$0xff] }
  0x29   : > { %2426 = vmatpush.msra.mxu3 %v400_v10  ;;  %556 = vmatpush.msra.mxu0 %v400_v10  ;;  %v469_v0 = vld [vmem:[%s3670_s1 + $0x250] sm:$0xff]  ;;  %v415_v2 = vld [vmem:[%s3670_s1 + $0xa0] sm:$0xff]  ;;  %v468_v4 = vld [vmem:[%s3670_s1 + $0x248] sm:$0xff] }
  0x2a   : > { %2427 = vmatpush.msra.mxu1 %v399_v11  ;;  %2428 = vmatpush.msra.mxu2 %v399_v11  ;;  %v332_v5 = vld [vmem:[%s2882_s20 + $0x188] sm:$0xff]  ;;  %v414_v7 = vld [vmem:[%s3670_s1 + $0x98] sm:$0xff]  ;;  %v447_v9 = vld [vmem:[%s3670_s1 + $0x1a0] sm:$0xff] }
  0x2b   : > { %2429 = vmatpush.msra.mxu3 %v399_v11  ;;  %557 = vmatpush.msra.mxu0 %v399_v11  ;;  %v360_v6 = vld [vmem:[%s2882_s20 + $0x268] sm:$0xff]  ;;  %v430_v8 = vld [vmem:[%s3670_s1 + $0x118] sm:$0xff]  ;;  %v467_v10 = vld [vmem:[%s3670_s1 + $0x240] sm:$0xff] }
  0x2c   : > { %2430 = vmatpush.msra.mxu1 %v398_v12  ;;  %2431 = vmatpush.msra.mxu2 %v398_v12  ;;  %v388_v11 = vld [vmem:[%s2882_s20 + $0x348] sm:$0xff] }
  0x2d   : > { %2432 = vmatpush.msra.mxu3 %v398_v12  ;;  %558 = vmatpush.msra.mxu0 %v398_v12  ;;  %v297_v12 = vld [vmem:[%s2882_s20 + $0x70] sm:$0xff] }
  0x2e   : > { %2433 = vmatpush.msra.mxu1 %v397_v13  ;;  %2434 = vmatpush.msra.mxu2 %v397_v13 }
  0x2f   : > { %2435 = vmatpush.msra.mxu3 %v397_v13  ;;  %559 = vmatpush.msra.mxu0 %v397_v13  ;;  %v429_v13 = vld [vmem:[%s3670_s1 + $0x110] sm:$0xff] }
  0x30   : > { %2436 = vmatpush.msra.mxu1 %v396_v14  ;;  %2437 = vmatpush.msra.mxu2 %v396_v14 }
  0x31   : > { %2438 = vmatpush.msra.mxu3 %v396_v14  ;;  %560 = vmatpush.msra.mxu0 %v396_v14  ;;  %v413_v14 = vld [vmem:[%s3670_s1 + $0x90] sm:$0xff] }
  0x32   : > { %2439 = vmatpush.msra.mxu1 %v395_v15  ;;  %2440 = vmatpush.msra.mxu2 %v395_v15 }
  0x33   : > { %574 = vmatmul.f32.vlgmr.msra.gmra.mxu1 %v311_v16  ;;  %586 = vmatmul.f32.vlgmr.msra.gmra.mxu2 %v339_v17  ;;  %v466_v16 = vld [vmem:[%s3670_s1 + $0x238] sm:$0xff]  ;;  %v428_v17 = vld [vmem:[%s3670_s1 + $0x108] sm:$0xff] }
  0x34   : > { %676 = vmatpush.msrb.mxu2 %v442_v18  ;;  %2441 = vmatpush.msra.mxu3 %v395_v15  ;;  %v412_v18 = vld [vmem:[%s3670_s1 + $0x88] sm:$0xff] }
  0x35   : > { %611 = vmatpush.msrb.mxu1 %v426_v19  ;;  %598 = vmatmul.f32.vlgmr.msra.gmra.mxu3 %v367_v20  ;;  %v445_v19 = vld [vmem:[%s3670_s1 + $0x190] sm:$0xff] }
  0x36   : > { %677 = vmatpush.msrb.mxu2 %v441_v21  ;;  %741 = vmatpush.msrb.mxu3 %v458_v22  ;;  %v465_v20 = vld [vmem:[%s3670_s1 + $0x230] sm:$0xff]  ;;  %v427_v21 = vld [vmem:[%s3670_s1 + $0x100] sm:$0xff] }
  0x37   : > { %612 = vmatpush.msrb.mxu1 %v425_v23  ;;  %561 = vmatpush.msra.mxu0 %v395_v15  ;;  %v446_v15 = vld [vmem:[%s3670_s1 + $0x198] sm:$0xff]  ;;  %v411_v22 = vld [vmem:[%s3670_s1 + $0x80] sm:$0xff]  ;;  %v444_v23 = vld [vmem:[%s3670_s1 + $0x188] sm:$0xff] }
  0x38   : > { %678 = vmatpush.msrb.mxu2 %v440_v24  ;;  %742 = vmatpush.msrb.mxu3 %v457_v25  ;;  %v464_v24 = vld [vmem:[%s3670_s1 + $0x228] sm:$0xff] }
  0x39   : > { %613 = vmatpush.msrb.mxu1 %v424_v26  ;;  %562 = vmatmul.f32.vlgmr.msra.gmra.mxu0 %v283_v27  ;;  %v284_v25 = vld [vmem:[%s2882_s20 + $0x8] sm:$0xff]  ;;  %v285_v26 = vld [vmem:[%s2882_s20 + $0x10] sm:$0xff]  ;;  %v443_v27 = vld [vmem:[%s3670_s1 + $0x180] sm:$0xff] }
  0x3a   : > { %679 = vmatpush.msrb.mxu2 %v439_v28  ;;  %743 = vmatpush.msrb.mxu3 %v456_v29  ;;  %v492_v28 = vld [vmem:[%s3670_s1 + $0x308] sm:$0xff]  ;;  %v463_v29 = vld [vmem:[%s3670_s1 + $0x220] sm:$0xff] }
  0x3b   : > { %614 = vmatpush.msrb.mxu1 %v423_v30  ;;  %589 = vmatmul.f32.gmra.mxu2 %v346_v31  ;;  %v304_v30 = vld [vmem:[%s2882_s20 + $0xa8] sm:$0xff]  ;;  %v286_v31 = vld [vmem:[%s2882_s20 + $0x18] sm:$0xff] }
  0x3c   : > { %577 = vmatmul.f32.gmra.mxu1 %v318_v32  ;;  %680 = vmatpush.msrb.mxu2 %v438_v33  ;;  %v462_v32 = vld [vmem:[%s3670_s1 + $0x218] sm:$0xff] }
  0x3d   : > { %615 = vmatpush.msrb.mxu1 %v422_v34  ;;  %744 = vmatpush.msrb.mxu3 %v455_v35  ;;  %v490_v33 = vld [vmem:[%s3670_s1 + $0x2f8] sm:$0xff]  ;;  %v461_v34 = vld [vmem:[%s3670_s1 + $0x210] sm:$0xff] }
  0x3e   : > { %601 = vmatmul.f32.gmra.mxu3 %v374_v36  ;;  %681 = vmatpush.msrb.mxu2 %v437_v37  ;;  %v489_v35 = vld [vmem:[%s3670_s1 + $0x2f0] sm:$0xff]  ;;  %v460_v36 = vld [vmem:[%s3670_s1 + $0x208] sm:$0xff]  ;;  %v291_v37 = vld [vmem:[%s2882_s20 + $0x40] sm:$0xff] }
  0x3f   : > { %616 = vmatpush.msrb.mxu1 %v421_v38  ;;  %745 = vmatpush.msrb.mxu3 %v454_v39  ;;  %v292_v38 = vld [vmem:[%s2882_s20 + $0x48] sm:$0xff] }
  0x40   : > { %806 = vmatpush.msrb.mxu0 %v474_v40  ;;  %682 = vmatpush.msrb.mxu2 %v436_v41  ;;  %v488_v39 = vld [vmem:[%s3670_s1 + $0x2e8] sm:$0xff]  ;;  %v459_v40 = vld [vmem:[%s3670_s1 + $0x200] sm:$0xff]  ;;  %v293_v41 = vld [vmem:[%s2882_s20 + $0x50] sm:$0xff] }
  0x41   : > { %617 = vmatpush.msrb.mxu1 %v420_v42  ;;  %746 = vmatpush.msrb.mxu3 %v453_v43  ;;  %v287_v42 = vld [vmem:[%s2882_s20 + $0x20] sm:$0xff] }
  0x42   : > { %807 = vmatpush.msrb.mxu0 %v473_v44  ;;  %683 = vmatpush.msrb.mxu2 %v435_v45  ;;  %v487_v43 = vld [vmem:[%s3670_s1 + $0x2e0] sm:$0xff]  ;;  %v486_v44 = vld [vmem:[%s3670_s1 + $0x2d8] sm:$0xff] }
  0x43   : > { %618 = vmatpush.msrb.mxu1 %v419_v46  ;;  %747 = vmatpush.msrb.mxu3 %v452_v47  ;;  %v298_v45 = vld [vmem:[%s2882_s20 + $0x78] sm:$0xff]  ;;  %v299_v46 = vld [vmem:[%s2882_s20 + $0x80] sm:$0xff]  ;;  %v485_v47 = vld [vmem:[%s3670_s1 + $0x2d0] sm:$0xff] }
  0x44   : > { %808 = vmatpush.msrb.mxu0 %v472_v48  ;;  %580 = vmatmul.f32.gmra.mxu1 %v325_v49  ;;  %v300_v48 = vld [vmem:[%s2882_s20 + $0x88] sm:$0xff]  ;;  %v294_v49 = vld [vmem:[%s2882_s20 + $0x58] sm:$0xff] }
  0x45   : > { %592 = vmatmul.f32.gmra.mxu2 %v353_v50  ;;  %619 = vmatpush.msrb.mxu1 %v418_v51  ;;  %v484_v50 = vld [vmem:[%s3670_s1 + $0x2c8] sm:$0xff]  ;;  %v305_v51 = vld [vmem:[%s2882_s20 + $0xb0] sm:$0xff] }
  0x46   : > { %684 = vmatpush.msrb.mxu2 %v434_v52  ;;  %748 = vmatpush.msrb.mxu3 %v451_v53  ;;  %v306_v52 = vld [vmem:[%s2882_s20 + $0xb8] sm:$0xff]  ;;  %v307_v53 = vld [vmem:[%s2882_s20 + $0xc0] sm:$0xff] }
  0x47   : > { %809 = vmatpush.msrb.mxu0 %v471_v54  ;;  %604 = vmatmul.f32.gmra.mxu3 %v381_v55  ;;  %v301_v54 = vld [vmem:[%s2882_s20 + $0x90] sm:$0xff]  ;;  %v483_v55 = vld [vmem:[%s3670_s1 + $0x2c0] sm:$0xff] }
  0x48   : > { %565 = vmatmul.f32.gmra.mxu0 %v290_v56  ;;  %685 = vmatpush.msrb.mxu2 %v433_v57  ;;  %v312_v56 = vld [vmem:[%s2882_s20 + $0xe8] sm:$0xff]  ;;  %v313_v57 = vld [vmem:[%s2882_s20 + $0xf0] sm:$0xff] }
  0x49   : > { %620 = vmatpush.msrb.mxu1 %v417_v58  ;;  %749 = vmatpush.msrb.mxu3 %v450_v59  ;;  %v314_v58 = vld [vmem:[%s2882_s20 + $0xf8] sm:$0xff]  ;;  %v308_v59 = vld [vmem:[%s2882_s20 + $0xc8] sm:$0xff] }
  0x4a   : > { %810 = vmatpush.msrb.mxu0 %v470_v60  ;;  %686 = vmatpush.msrb.mxu2 %v432_v61  ;;  %v491_v60 = vld [vmem:[%s3670_s1 + $0x300] sm:$0xff]  ;;  %v482_v61 = vld [vmem:[%s3670_s1 + $0x2b8] sm:$0xff] }
  0x4b   : > { %621 = vmatpush.msrb.mxu1 %v416_v62  ;;  %750 = vmatpush.msrb.mxu3 %v449_v63  ;;  %v319_v62 = vld [vmem:[%s2882_s20 + $0x120] sm:$0xff]  ;;  %v320_v63 = vld [vmem:[%s2882_s20 + $0x128] sm:$0xff] }
  0x4c   : > { %811 = vmatpush.msrb.mxu0 %v469_v0  ;;  %687 = vmatpush.msrb.mxu2 %v431_v1  ;;  %v321_v0 = vld [vmem:[%s2882_s20 + $0x130] sm:$0xff]  ;;  %v315_v1 = vld [vmem:[%s2882_s20 + $0x100] sm:$0xff] }
  0x4d   : > { %622 = vmatpush.msrb.mxu1 %v415_v2  ;;  %751 = vmatpush.msrb.mxu3 %v448_v3  ;;  %v481_v2 = vld [vmem:[%s3670_s1 + $0x2b0] sm:$0xff]  ;;  %v326_v3 = vld [vmem:[%s2882_s20 + $0x158] sm:$0xff] }
  0x4e   : > { %812 = vmatpush.msrb.mxu0 %v468_v4  ;;  %583 = vmatmul.f32.gmra.mxu1 %v332_v5  ;;  %v327_v4 = vld [vmem:[%s2882_s20 + $0x160] sm:$0xff]  ;;  %v328_v5 = vld [vmem:[%s2882_s20 + $0x168] sm:$0xff] }
  0x4f   : > { %595 = vmatmul.f32.gmra.mxu2 %v360_v6  ;;  %623 = vmatpush.msrb.mxu1 %v414_v7  ;;  %v322_v6 = vld [vmem:[%s2882_s20 + $0x138] sm:$0xff]  ;;  %v480_v7 = vld [vmem:[%s3670_s1 + $0x2a8] sm:$0xff] }
  0x50   : > { %688 = vmatpush.msrb.mxu2 %v430_v8  ;;  %752 = vmatpush.msrb.mxu3 %v447_v9  ;;  %v333_v8 = vld [vmem:[%s2882_s20 + $0x190] sm:$0xff]  ;;  %v334_v9 = vld [vmem:[%s2882_s20 + $0x198] sm:$0xff] }
  0x51   : > { %813 = vmatpush.msrb.mxu0 %v467_v10  ;;  %607 = vmatmul.f32.gmra.mxu3 %v388_v11  ;;  %v335_v10 = vld [vmem:[%s2882_s20 + $0x1a0] sm:$0xff]  ;;  %v329_v11 = vld [vmem:[%s2882_s20 + $0x170] sm:$0xff] }
  0x52   : > { %568 = vmatmul.f32.gmra.mxu0 %v297_v12  ;;  %689 = vmatpush.msrb.mxu2 %v429_v13  ;;  %v479_v12 = vld [vmem:[%s3670_s1 + $0x2a0] sm:$0xff]  ;;  %v340_v13 = vld [vmem:[%s2882_s20 + $0x1c8] sm:$0xff] }
  0x53   : > { %624 = vmatpush.msrb.mxu1 %v413_v14  ;;  %753 = vmatpush.msrb.mxu3 %v446_v15  ;;  %v341_v14 = vld [vmem:[%s2882_s20 + $0x1d0] sm:$0xff]  ;;  %v342_v15 = vld [vmem:[%s2882_s20 + $0x1d8] sm:$0xff] }
  0x54   : > { %814 = vmatpush.msrb.mxu0 %v466_v16  ;;  %690 = vmatpush.msrb.mxu2 %v428_v17  ;;  %v336_v16 = vld [vmem:[%s2882_s20 + $0x1a8] sm:$0xff]  ;;  %v478_v17 = vld [vmem:[%s3670_s1 + $0x298] sm:$0xff] }
  0x55   : > { %625 = vmatpush.msrb.mxu1 %v412_v18  ;;  %754 = vmatpush.msrb.mxu3 %v445_v19  ;;  %v347_v18 = vld [vmem:[%s2882_s20 + $0x200] sm:$0xff]  ;;  %v348_v19 = vld [vmem:[%s2882_s20 + $0x208] sm:$0xff] }
  0x56   : > { %815 = vmatpush.msrb.mxu0 %v465_v20  ;;  %691 = vmatpush.msrb.mxu2 %v427_v21  ;;  %v349_v20 = vld [vmem:[%s2882_s20 + $0x210] sm:$0xff]  ;;  %v343_v21 = vld [vmem:[%s2882_s20 + $0x1e0] sm:$0xff] }
  0x57   : > { %626 = vmatpush.msrb.mxu1 %v411_v22  ;;  %755 = vmatpush.msrb.mxu3 %v444_v23  ;;  %v477_v22 = vld [vmem:[%s3670_s1 + $0x290] sm:$0xff]  ;;  %v354_v23 = vld [vmem:[%s2882_s20 + $0x238] sm:$0xff] }
  0x58   : > { %816 = vmatpush.msrb.mxu0 %v464_v24  ;;  %627 = vmatmul.f32.vlgmr.msrb.gmra.mxu1 %v284_v25  ;;  %v355_v24 = vld [vmem:[%s2882_s20 + $0x240] sm:$0xff]  ;;  %v356_v25 = vld [vmem:[%s2882_s20 + $0x248] sm:$0xff] }
  0x59   : > { %692 = vmatmul.f32.vlgmr.msrb.gmra.mxu2 %v285_v26  ;;  %756 = vmatpush.msrb.mxu3 %v443_v27  ;;  %v350_v26 = vld [vmem:[%s2882_s20 + $0x218] sm:$0xff]  ;;  %v476_v27 = vld [vmem:[%s3670_s1 + $0x288] sm:$0xff] }
  0x5a   : > { %950 = vmatpush.msra.mxu2 %v492_v28  ;;  %817 = vmatpush.msrb.mxu0 %v463_v29  ;;  %v361_v28 = vld [vmem:[%s2882_s20 + $0x270] sm:$0xff]  ;;  %v362_v29 = vld [vmem:[%s2882_s20 + $0x278] sm:$0xff] }
  0x5b   : > { %571 = vmatmul.f32.gmra.mxu0 %v304_v30  ;;  %757 = vmatmul.f32.vlgmr.msrb.gmra.mxu3 %v286_v31  ;;  %v363_v30 = vld [vmem:[%s2882_s20 + $0x280] sm:$0xff]  ;;  %v357_v31 = vld [vmem:[%s2882_s20 + $0x250] sm:$0xff] }
  0x5c   : > { %818 = vmatpush.msrb.mxu0 %v462_v32  ;;  %871 = vmatpush.msra.mxu1 %v490_v33  ;;  %v475_v33 = vld [vmem:[%s3670_s1 + $0x280] sm:$0xff] }
  0x5d   : > { %951 = vmatpush.msra.mxu2 %v491_v60 }
  0x5e   : > { %819 = vmatpush.msrb.mxu0 %v461_v34  ;;  %872 = vmatpush.msra.mxu1 %v489_v35  ;;  %v368_v34 = vld [vmem:[%s2882_s20 + $0x2a8] sm:$0xff]  ;;  %v369_v35 = vld [vmem:[%s2882_s20 + $0x2b0] sm:$0xff] }
  0x60   : > { %820 = vmatpush.msrb.mxu0 %v460_v36  ;;  %630 = vmatmul.f32.gmra.mxu1 %v291_v37  ;;  %v370_v37 = vld [vmem:[%s2882_s20 + $0x2b8] sm:$0xff] }
  0x61   : > { %695 = vmatmul.f32.gmra.mxu2 %v292_v38  ;;  %873 = vmatpush.msra.mxu1 %v488_v39  ;;  %v364_v38 = vld [vmem:[%s2882_s20 + $0x288] sm:$0xff] }
  0x62   : > { %821 = vmatpush.msrb.mxu0 %v459_v40  ;;  %v375_v40 = vld [vmem:[%s2882_s20 + $0x2e0] sm:$0xff] }
  0x63   : > { %760 = vmatmul.f32.gmra.mxu3 %v293_v41  ;;  %822 = vmatmul.f32.vlgmr.msrb.gmra.mxu0 %v287_v42  ;;  %v376_v41 = vld [vmem:[%s2882_s20 + $0x2e8] sm:$0xff] }
  0x64   : > { %874 = vmatpush.msra.mxu1 %v487_v43  ;;  %v377_v43 = vld [vmem:[%s2882_s20 + $0x2f0] sm:$0xff] }
  0x66   : > { %875 = vmatpush.msra.mxu1 %v486_v44  ;;  %v371_v44 = vld [vmem:[%s2882_s20 + $0x2c0] sm:$0xff] }
  0x68   : > { %633 = vmatmul.f32.gmra.mxu1 %v298_v45 }
  0x69   : > { %698 = vmatmul.f32.gmra.mxu2 %v299_v46  ;;  %876 = vmatpush.msra.mxu1 %v485_v47  ;;  %v382_v46 = vld [vmem:[%s2882_s20 + $0x318] sm:$0xff]  ;;  %v383_v47 = vld [vmem:[%s2882_s20 + $0x320] sm:$0xff] }
  0x6b   : > { %763 = vmatmul.f32.gmra.mxu3 %v300_v48  ;;  %825 = vmatmul.f32.gmra.mxu0 %v294_v49  ;;  %v3219_v48 = vld [vmem:[%s3671_s2] ss:$0 sm:$0xff]  ;;  %v384_v49 = vld [vmem:[%s2882_s20 + $0x328] sm:$0xff] }
  0x6c   : > { %877 = vmatpush.msra.mxu1 %v484_v50  ;;  %v378_v50 = vld [vmem:[%s2882_s20 + $0x2f8] sm:$0xff] }
  0x6e   : > { %878 = vmatpush.msra.mxu1 %v483_v55  ;;  %v390_v55 = vld [vmem:[%s2882_s20 + $0x358] sm:$0xff] }
  0x70   : > { %636 = vmatmul.f32.gmra.mxu1 %v305_v51 }
  0x71   : > { %701 = vmatmul.f32.gmra.mxu2 %v306_v52  ;;  %879 = vmatpush.msra.mxu1 %v482_v61  ;;  %v288_v61 = vld [vmem:[%s2882_s20 + $0x28] sm:$0xff] }
  0x73   : > { %766 = vmatmul.f32.gmra.mxu3 %v307_v53  ;;  %828 = vmatmul.f32.gmra.mxu0 %v301_v54  ;;  %v389_v54 = vld [vmem:[%s2882_s20 + $0x350] sm:$0xff] }
  0x74   : > { %880 = vmatpush.msra.mxu1 %v481_v2 }
  0x76   : > { %881 = vmatpush.msra.mxu1 %v480_v7  ;;  %v302_v7 = vld [vmem:[%s2882_s20 + $0x98] sm:$0xff] }
  0x78   : > { %639 = vmatmul.f32.gmra.mxu1 %v312_v56  ;;  %v391_v56 = vld [vmem:[%s2882_s20 + $0x360] sm:$0xff] }
  0x79   : > { %704 = vmatmul.f32.gmra.mxu2 %v313_v57  ;;  %882 = vmatpush.msra.mxu1 %v479_v12  ;;  %v385_v57 = vld [vmem:[%s2882_s20 + $0x330] sm:$0xff]  ;;  %v310_v12 = vld [vmem:[%s2882_s20 + $0xd8] sm:$0xff] }
  0x7b   : > { %769 = vmatmul.f32.gmra.mxu3 %v314_v58  ;;  %831 = vmatmul.f32.gmra.mxu0 %v308_v59 }
  0x7c   : > { %883 = vmatpush.msra.mxu1 %v478_v17 }
  0x7e   : > { %884 = vmatpush.msra.mxu1 %v477_v22 }
  0x80   : > { %642 = vmatmul.f32.gmra.mxu1 %v319_v62  ;;  %v289_v62 = vld [vmem:[%s2882_s20 + $0x30] sm:$0xff] }
  0x81   : > { %707 = vmatmul.f32.gmra.mxu2 %v320_v63  ;;  %885 = vmatpush.msra.mxu1 %v476_v27  ;;  %v392_v63 = vld [vmem:[%s2882_s20 + $0x368] sm:$0xff] }
  0x83   : > { %772 = vmatmul.f32.gmra.mxu3 %v321_v0  ;;  %834 = vmatmul.f32.gmra.mxu0 %v315_v1  ;;  %v1305_v0 = vld [vmem:[%s3672_s3] sm:$0x7] }
  0x84   : > { %886 = vmatpush.msra.mxu1 %v475_v33  ;;  %2338 = vmatpush.msk.msra.mxu3 %vm1359_vm1, %v1305_v0 }
  0x88   : > { %645 = vmatmul.f32.gmra.mxu1 %v326_v3  ;;  %v295_v3 = vld [vmem:[%s2882_s20 + $0x60] sm:$0xff] }
  0x89   : > { %710 = vmatmul.f32.gmra.mxu2 %v327_v4  ;;  %v296_v4 = vld [vmem:[%s2882_s20 + $0x68] sm:$0xff] }
  0x8b   : > { %775 = vmatmul.f32.gmra.mxu3 %v328_v5  ;;  %837 = vmatmul.f32.gmra.mxu0 %v322_v6 }
  0x90   : > { %648 = vmatmul.f32.gmra.mxu1 %v333_v8  ;;  %v303_v8 = vld [vmem:[%s2882_s20 + $0xa0] sm:$0xff] }
  0x91   : > { %713 = vmatmul.f32.gmra.mxu2 %v334_v9 }
  0x93   : > { %778 = vmatmul.f32.gmra.mxu3 %v335_v10  ;;  %840 = vmatmul.f32.gmra.mxu0 %v329_v11  ;;  %v309_v11 = vld [vmem:[%s2882_s20 + $0xd0] sm:$0xff] }
  0x98   : > { %651 = vmatmul.f32.gmra.mxu1 %v340_v13 }
  0x99   : > { %716 = vmatmul.f32.gmra.mxu2 %v341_v14 }
  0x9b   : > { %781 = vmatmul.f32.gmra.mxu3 %v342_v15  ;;  %843 = vmatmul.f32.gmra.mxu0 %v336_v16  ;;  %v316_v15 = vld [vmem:[%s2882_s20 + $0x108] sm:$0xff]  ;;  %v317_v16 = vld [vmem:[%s2882_s20 + $0x110] sm:$0xff] }
  0xa0   : > { %654 = vmatmul.f32.gmra.mxu1 %v347_v18 }
  0xa1   : > { %719 = vmatmul.f32.gmra.mxu2 %v348_v19  ;;  %v323_v19 = vld [vmem:[%s2882_s20 + $0x140] sm:$0xff] }
  0xa3   : > { %784 = vmatmul.f32.gmra.mxu3 %v349_v20  ;;  %846 = vmatmul.f32.gmra.mxu0 %v343_v21  ;;  %v324_v20 = vld [vmem:[%s2882_s20 + $0x148] sm:$0xff] }
  0xa8   : > { %657 = vmatmul.f32.gmra.mxu1 %v354_v23  ;;  %v330_v23 = vld [vmem:[%s2882_s20 + $0x178] sm:$0xff] }
  0xa9   : > { %722 = vmatmul.f32.gmra.mxu2 %v355_v24  ;;  %v331_v24 = vld [vmem:[%s2882_s20 + $0x180] sm:$0xff] }
  0xab   : > { %787 = vmatmul.f32.gmra.mxu3 %v356_v25  ;;  %849 = vmatmul.f32.gmra.mxu0 %v350_v26 }
  0xb0   : > { %660 = vmatmul.f32.gmra.mxu1 %v361_v28  ;;  %v3193_v32 = vpop.f32.mrf.mxu1  ;;  %v337_v28 = vld [vmem:[%s2882_s20 + $0x1b0] sm:$0xff] }
  0xb1   : > { %725 = vmatmul.f32.gmra.mxu2 %v362_v29  ;;  %v338_v29 = vld [vmem:[%s2882_s20 + $0x1b8] sm:$0xff] }
  0xb3   : > { %790 = vmatmul.f32.gmra.mxu3 %v363_v30  ;;  %852 = vmatmul.f32.gmra.mxu0 %v357_v31 }
  0xb6   : > { %v3200_v36 = vpop.f32.mrf.mxu2  ;;  %v3293_v30 = vpop.f32.mrf.mxu0 }
  0xb7   : > { %v588_v31 = vadd.f32 %v3219_v48, %v3200_v36 }
  0xb8   : > { %663 = vmatmul.f32.gmra.mxu1 %v368_v34  ;;  %v599_v25 = vpop.f32.mrf.mxu3 }
  0xb9   : > { %728 = vmatmul.f32.gmra.mxu2 %v369_v35  ;;  %v3204_v39 = vpop.f32.mrf.mxu1 }
  0xbb   : > { %793 = vmatmul.f32.gmra.mxu3 %v370_v37  ;;  %855 = vmatmul.f32.gmra.mxu0 %v364_v38  ;;  %v344_v37 = vld [vmem:[%s2882_s20 + $0x1e8] sm:$0xff] }
  0xbe   : > { %v3208_v42 = vpop.f32.mrf.mxu2 }
  0xc0   : > { %666 = vmatmul.f32.gmra.mxu1 %v375_v40  ;;  %v345_v40 = vld [vmem:[%s2882_s20 + $0x1f0] sm:$0xff] }
  0xc1   : > { %731 = vmatmul.f32.gmra.mxu2 %v376_v41  ;;  %v3212_v45 = vpop.f32.mrf.mxu1  ;;  %v602_v34 = vpop.f32.mrf.mxu3 }
  0xc3   : > { %796 = vmatmul.f32.gmra.mxu3 %v377_v43  ;;  %858 = vmatmul.f32.gmra.mxu0 %v371_v44  ;;  %v591_v43 = vadd.f32 %v3219_v48, %v3208_v42 }
  0xc5   : > { %v3302_v41 = vpop.f32.mrf.mxu0 }
  0xc8   : > { %669 = vmatmul.f32.gmra.mxu1 %v382_v46  ;;  %v593_v51 = vpop.f32.mrf.mxu2 }
  0xc9   : > { %734 = vmatmul.f32.gmra.mxu2 %v383_v47  ;;  %v3224_v52 = vadd.f32 %v3219_v48, %v593_v51  ;;  %v351_v47 = vld [vmem:[%s2882_s20 + $0x220] sm:$0xff] }
  0xca   : > { %v605_v51 = vpop.f32.mrf.mxu3 }
  0xcb   : > { %799 = vmatmul.f32.gmra.mxu3 %v384_v49  ;;  %861 = vmatmul.f32.gmra.mxu0 %v378_v50  ;;  %v3226_v53 = vpop.f32.mrf.mxu1  ;;  %v352_v50 = vld [vmem:[%s2882_s20 + $0x228] sm:$0xff] }
  0xd0   : > { %672 = vmatmul.f32.gmra.mxu1 %v389_v54  ;;  %v3312_v54 = vpop.f32.mrf.mxu0 }
  0xd1   : > { %737 = vmatmul.f32.gmra.mxu2 %v390_v55 }
  0xd2   : > { %v596_v58 = vpop.f32.mrf.mxu2 }
  0xd3   : > { %802 = vmatmul.f32.gmra.mxu3 %v391_v56  ;;  %864 = vmatmul.f32.gmra.mxu0 %v385_v57  ;;  %v3233_v59 = vadd.f32 %v3219_v48, %v596_v58  ;;  %v358_v57 = vld [vmem:[%s2882_s20 + $0x258] sm:$0xff] }
  0xd5   : > { %v3235_v60 = vpop.f32.mrf.mxu1 }
  0xd8   : > { %887 = vmatmul.f32.vlgmr.msra.gmra.mxu1 %v288_v61  ;;  %v359_v61 = vld [vmem:[%s2882_s20 + $0x260] sm:$0xff]  ;;  %v3320_v0 = vpop.f32.mrf.mxu0 }
  0xd9   : > { %2306 = vmatmul.msk.f32.vlgmr.msra.gmra.mxu2 %vm497_vm0, %v289_v62  ;;  %v608_v62 = vpop.f32.mrf.mxu3 }
  0xdb   : > { %867 = vmatmul.f32.gmra.mxu0 %v392_v63 }
  0xdc   : > { %v3245_v1 = vpop.f32.mrf.mxu2 }
  0xdd   : > { %v3247_v2 = vpop.f32.mrf.mxu1 }
  0xe0   : > { %890 = vmatmul.f32.gmra.mxu1 %v295_v3 }
  0xe1   : > { %2307 = vmatmul.msk.f32.gmra.mxu2 %vm497_vm0, %v296_v4 }
  0xe4   : > { %v3252_v5 = vpop.f32.mrf.mxu2 }
  0xe5   : > { %v3254_v6 = vpop.f32.mrf.mxu1 }
  0xe8   : > { %893 = vmatmul.f32.gmra.mxu1 %v302_v7  ;;  %v365_v7 = vld [vmem:[%s2882_s20 + $0x290] sm:$0xff] }
  0xe9   : > { %2308 = vmatmul.msk.f32.gmra.mxu2 %vm497_vm0, %v303_v8 }
  0xec   : > { %v3259_v9 = vpop.f32.mrf.mxu2 }
  0xed   : > { %v3261_v10 = vpop.f32.mrf.mxu1 }
  0xf0   : > { %896 = vmatmul.f32.gmra.mxu1 %v309_v11  ;;  %v366_v11 = vld [vmem:[%s2882_s20 + $0x298] sm:$0xff] }
  0xf1   : > { %2309 = vmatmul.msk.f32.gmra.mxu2 %vm497_vm0, %v310_v12  ;;  %v758_v12 = vpop.f32.mrf.mxu3 }
  0xf4   : > { %v3266_v13 = vpop.f32.mrf.mxu2 }
  0xf5   : > { %v3268_v14 = vpop.f32.mrf.mxu1 }
  0xf8   : > { %899 = vmatmul.f32.gmra.mxu1 %v316_v15 }
  0xf9   : > { %2310 = vmatmul.msk.f32.gmra.mxu2 %vm497_vm0, %v317_v16 }
  0xfc   : > { %v3273_v17 = vpop.f32.mrf.mxu2 }
  0xfd   : > { %v3275_v18 = vpop.f32.mrf.mxu1 }
 0x100   : > { %902 = vmatmul.f32.gmra.mxu1 %v323_v19 }
 0x101   : > { %2311 = vmatmul.msk.f32.gmra.mxu2 %vm497_vm0, %v324_v20  ;;  %v372_v20 = vld [vmem:[%s2882_s20 + $0x2c8] sm:$0xff] }
 0x104   : > { %v3280_v21 = vpop.f32.mrf.mxu2 }
 0x105   : > { %v3282_v22 = vpop.f32.mrf.mxu1 }
 0x108   : > { %905 = vmatmul.f32.gmra.mxu1 %v330_v23 }
 0x109   : > { %2312 = vmatmul.msk.f32.gmra.mxu2 %vm497_vm0, %v331_v24  ;;  %v373_v24 = vld [vmem:[%s2882_s20 + $0x2d0] sm:$0xff] }
 0x10c   : > { %v3287_v26 = vpop.f32.mrf.mxu2 }
 0x10d   : > { %v3289_v27 = vpop.f32.mrf.mxu1 }
 0x110   : > { %908 = vmatmul.f32.gmra.mxu1 %v337_v28  ;;  %v823_v28 = vpop.f32.mrf.mxu0 }
 0x111   : > { %2313 = vmatmul.msk.f32.gmra.mxu2 %vm497_vm0, %v338_v29 }
 0x114   : > { %v3298_v33 = vpop.f32.mrf.mxu2 }
 0x115   : > { %v652_v35 = vpop.f32.mrf.mxu1 }
 0x116   : > { %v653_v38 = vadd.f32 %v652_v35, %v588_v31 }
 0x118   : > { %911 = vmatmul.f32.gmra.mxu1 %v344_v37  ;;  %v379_v37 = vld [vmem:[%s2882_s20 + $0x300] sm:$0xff] }
 0x119   : > { %2314 = vmatmul.msk.f32.gmra.mxu2 %vm497_vm0, %v345_v40  ;;  %v380_v40 = vld [vmem:[%s2882_s20 + $0x308] sm:$0xff] }
 0x11c   : > { %v717_v44 = vpop.f32.mrf.mxu2 }
 0x11d   : > { %v3307_v36 = vadd.f32 %v717_v44, %v653_v38  ;;  %v655_v46 = vpop.f32.mrf.mxu1  ;;  %v606_v44 = vadd.f32 %v3219_v48, %v605_v51 }
 0x11e   : > { %v656_v49 = vadd.f32 %v655_v46, %v591_v43  ;;  %v826_v43 = vpop.f32.mrf.mxu0 }
 0x120   : > { %914 = vmatmul.f32.gmra.mxu1 %v351_v47 }
 0x121   : > { %2315 = vmatmul.msk.f32.gmra.mxu2 %vm497_vm0, %v352_v50 }
 0x124   : > { %v720_v55 = vpop.f32.mrf.mxu2 }
 0x125   : > { %v3314_v56 = vadd.f32 %v720_v55, %v656_v49  ;;  %v658_v42 = vpop.f32.mrf.mxu1  ;;  %v386_v49 = vld [vmem:[%s2882_s20 + $0x338] sm:$0xff]  ;;  %v387_v55 = vld [vmem:[%s2882_s20 + $0x340] sm:$0xff] }
 0x126   : > { %v659_v58 = vadd.f32 %v658_v42, %v3224_v52  ;;  %v600_v52 = vadd.f32 %v3219_v48, %v599_v25  ;;  %v761_v25 = vpop.f32.mrf.mxu3 }
 0x128   : > { %917 = vmatmul.f32.gmra.mxu1 %v358_v57  ;;  %v564_v57 = vadd.f32 %v3219_v48, %v3293_v30 }
 0x129   : > { %2316 = vmatmul.msk.f32.gmra.mxu2 %vm497_vm0, %v359_v61  ;;  %v829_v61 = vpop.f32.mrf.mxu0 }
 0x12c   : > { %v723_v63 = vpop.f32.mrf.mxu2 }
 0x12d   : > { %v3322_v3 = vadd.f32 %v723_v63, %v659_v58  ;;  %v661_v4 = vpop.f32.mrf.mxu1  ;;  %v609_v58 = vadd.f32 %v3219_v48, %v608_v62  ;;  %v629_v63 = vadd.f32 %v3235_v60, %v564_v57 }
 0x12e   : > { %v662_v8 = vadd.f32 %v661_v4, %v3233_v59  ;;  %v603_v59 = vadd.f32 %v3219_v48, %v602_v34  ;;  %v764_v42 = vpop.f32.mrf.mxu3 }
 0x12f   : > { %v694_v30 = vadd.f32 %v3245_v1, %v629_v63 }
 0x130   : > { %920 = vmatmul.f32.gmra.mxu1 %v365_v7 }
 0x131   : > { %2317 = vmatmul.msk.f32.gmra.mxu2 %vm497_vm0, %v366_v11  ;;  %v832_v60 = vpop.f32.mrf.mxu0 }
 0x134   : > { %v726_v15 = vpop.f32.mrf.mxu2 }
 0x135   : > { %v3329_v16 = vadd.f32 %v726_v15, %v662_v8  ;;  %v664_v19 = vpop.f32.mrf.mxu1  ;;  %v393_v8 = vld [vmem:[%s2882_s20 + $0x370] sm:$0xff]  ;;  %v567_v15 = vadd.f32 %v3219_v48, %v3302_v41 }
 0x136   : > { %v665_v23 = vadd.f32 %v664_v19, %v600_v52  ;;  %v394_v52 = vld [vmem:[%s2882_s20 + $0x378] sm:$0xff]  ;;  %v767_v19 = vpop.f32.mrf.mxu3  ;;  %s2222_s20 = scalar_lea.sflag [#allocation3], %s272_s9 }
 0x138   : > { %923 = vmatmul.f32.gmra.mxu1 %v372_v20  ;;  %v632_v20 = vadd.f32 %v3247_v2, %v567_v15 }
 0x139   : > { %2318 = vmatmul.msk.f32.gmra.mxu2 %vm497_vm0, %v373_v24  ;;  %v835_v2 = vpop.f32.mrf.mxu0 }
 0x13c   : > { %v729_v29 = vpop.f32.mrf.mxu2 }
 0x13d   : > { %v3335_v31 = vadd.f32 %v729_v29, %v665_v23  ;;  %v667_v35 = vpop.f32.mrf.mxu1  ;;  %v759_v23 = vadd.f32 %v758_v12, %v694_v30  ;;  %v570_v29 = vadd.f32 %v3219_v48, %v3312_v54 }
 0x13e   : > { %v668_v38 = vadd.f32 %v667_v35, %v603_v59  ;;  %v770_v41 = vpop.f32.mrf.mxu3 }
 0x13f   : > { %v824_v35 = vadd.f32 %v823_v28, %v759_v23 }
 0x140   : > { %926 = vmatmul.f32.gmra.mxu1 %v379_v37  ;;  %v697_v37 = vadd.f32 %v3252_v5, %v632_v20 }
 0x141   : > { %2319 = vmatmul.msk.f32.gmra.mxu2 %vm497_vm0, %v380_v40  ;;  %v635_v40 = vadd.f32 %v3254_v6, %v570_v29 }
 0x144   : > { %v732_v46 = vpop.f32.mrf.mxu2 }
 0x145   : > { %v3341_v47 = vadd.f32 %v732_v46, %v668_v38  ;;  %v670_v34 = vpop.f32.mrf.mxu1 }
 0x146   : > { %v671_v50 = vadd.f32 %v670_v34, %v606_v44  ;;  %v762_v44 = vadd.f32 %v761_v25, %v697_v37 }
 0x148   : > { %929 = vmatmul.f32.gmra.mxu1 %v386_v49  ;;  %v573_v49 = vadd.f32 %v3219_v48, %v3320_v0  ;;  %v3372_v0 = vpop.f32.mrf.mxu0 }
 0x149   : > { %2320 = vmatmul.msk.f32.gmra.mxu2 %vm497_vm0, %v387_v55  ;;  %v700_v55 = vadd.f32 %v3259_v9, %v635_v40  ;;  %v576_v9 = vadd.f32 %v3219_v48, %v3193_v32 }
 0x14a   : > { %v638_v5 = vadd.f32 %v3261_v10, %v573_v49 }
 0x14b   : > { %v765_v57 = vadd.f32 %v764_v42, %v700_v55  ;;  %v641_v42 = vadd.f32 %v3268_v14, %v576_v9 }
 0x14c   : > { %v735_v51 = vpop.f32.mrf.mxu2 }
 0x14d   : > { %v3350_v4 = vadd.f32 %v735_v51, %v671_v50  ;;  %v673_v7 = vpop.f32.mrf.mxu1  ;;  %v827_v50 = vadd.f32 %v826_v43, %v762_v44  ;;  %v706_v20 = vadd.f32 %v3273_v17, %v641_v42 }
 0x14e   : > { %v674_v11 = vadd.f32 %v673_v7, %v609_v58  ;;  %v3369_v58 = vpop.f32.mrf.mxu3 }
 0x14f   : > { %v771_v32 = vadd.f32 %v770_v41, %v706_v20 }
 0x150   : > { %932 = vmatmul.f32.gmra.mxu1 %v393_v8  ;;  %v830_v8 = vadd.f32 %v829_v61, %v765_v57  ;;  %v3383_v37 = vpop.f32.mrf.mxu0 }
 0x151   : > { %2321 = vmatmul.msk.f32.gmra.mxu2 %vm497_vm0, %v394_v52  ;;  %v836_v49 = vadd.f32 %v835_v2, %v771_v32 }
 0x154   : > { %v738_v62 = vpop.f32.mrf.mxu2 }
 0x155   : > { %v3359_v24 = vadd.f32 %v738_v62, %v674_v11  ;;  %v888_v59 = vpop.f32.mrf.mxu1  ;;  %v703_v11 = vadd.f32 %v3266_v13, %v638_v5 }
 0x156   : > { %v889_v38 = vadd.f32 %v888_v59, %v824_v35  ;;  %v3378_v61 = vpop.f32.mrf.mxu3 }
 0x157   : > { %v768_v52 = vadd.f32 %v767_v19, %v703_v11 }
 0x159   : > { %v833_v29 = vadd.f32 %v832_v60, %v768_v52 }
 0x15c   : > { %v953_v1 = vpop.f32.mrf.mxu2 }
 0x15d   : > { %v954_v46 = vadd.f32 %v953_v1, %v889_v38  ;;  %v891_v34 = vpop.f32.mrf.mxu1  ;;  %v579_v38 = vadd.f32 %v3219_v48, %v3204_v39 }
 0x15e   : > { %v892_v54 = vadd.f32 %v891_v34, %v827_v50  ;;  %v3391_v5 = vpop.f32.mrf.mxu3 }
 0x15f   : > { %v2322_v12 = vmul.f32 -1.442695, %v954_v46  ;;  %v644_v60 = vadd.f32 %v3275_v18, %v579_v38 }
 0x161   : > { %2487 = vpow2.f32 %v2322_v12 }
 0x164   : > { %v956_v28 = vpop.f32.mrf.mxu2 }
 0x165   : > { %v957_v6 = vadd.f32 %v956_v28, %v892_v54  ;;  %v894_v25 = vpop.f32.mrf.mxu1  ;;  %v709_v54 = vadd.f32 %v3280_v21, %v644_v60  ;;  %v582_v21 = vadd.f32 %v3219_v48, %v3212_v45 }
 0x166   : > { %v895_v43 = vadd.f32 %v894_v25, %v830_v8  ;;  %v3400_v8 = vpop.f32.mrf.mxu0 }
 0x167   : > { %v2488_v51 = vpop.eup %2487  ;;  %v2323_v63 = vmul.f32 -1.442695, %v957_v6  ;;  %v647_v42 = vadd.f32 %v3282_v22, %v582_v21 }
 0x168   : > { %v1049_v7 = vadd.f32 1.0, %v2488_v51  ;;  %v774_v51 = vadd.f32 %v3369_v58, %v709_v54  ;;  %v1732_v54 = vld [vmem:[%s3674_s5] sm:$0x7] }
 0x169   : > { %2489 = vpow2.f32 %v2323_v63  ;;  %2371 = vmatpush.msk.msra.mxu0 %vm1359_vm1, %v1732_v54 }
 0x16a   : > { %2491 = vrcp.f32 %v1049_v7  ;;  %v1076_v1 = vand.u32 2147483648, %v1049_v7  ;;  %v1074_v34 = vand.u32 2147483647, %v1049_v7  ;;  %vm1070_vm3 = vweird.f32 %v1049_v7 }
 0x16b   : > { %v839_v58 = vadd.f32 %v3372_v0, %v774_v51 }
 0x16c   : > { %v959_v10 = vpop.f32.mrf.mxu2  ;;  %v1077_v39 = vor.u32 1.1754944e-38, %v1076_v1  ;;  %vm1075_vm6 = vcmp.eq.f32.partialorder %v1074_v34, 8.507059e+37 }
 0x16d   : > { %v960_v15 = vadd.f32 %v959_v10, %v895_v43  ;;  %v897_v30 = vpop.f32.mrf.mxu1 }
 0x16e   : > { %v898_v19 = vadd.f32 %v897_v30, %v833_v29  ;;  %v3420_v34 = vpop.f32.mrf.mxu0 }
 0x16f   : > { %v2490_v62 = vpop.eup %2489  ;;  %v2324_v13 = vmul.f32 -1.442695, %v960_v15 }
 0x170   : > { %v2492_v23 = vpop.eup %2491  ;;  %v3380_v59 = vadd.f32 1.0, %v2490_v62  ;;  %v712_v62 = vadd.f32 %v3287_v26, %v647_v42  ;;  %v585_v26 = vadd.f32 %v3219_v48, %v3226_v53 }
 0x171   : > { %v1066_v35 = vmul.f32 %v2492_v23, %v1049_v7  ;;  %2493 = vpow2.f32 %v2324_v13  ;;  %vm1071_vm2 = vweird.f32 %v2492_v23 }
 0x172   : > { %2495 = vrcp.f32 %v3380_v59  ;;  %vm1072_vm4 = vmor %vm1070_vm3, %vm1071_vm2  ;;  %v1091_v7 = vand.u32 2147483648, %v3380_v59  ;;  %v1089_v10 = vand.u32 2147483647, %v3380_v59  ;;  %vm1085_vm8 = vweird.f32 %v3380_v59 }
 0x173   : > { %v1067_v14 = vsub.f32 1.0, %v1066_v35  ;;  %v3411_v35 = vpop.f32.mrf.mxu3  ;;  %v777_v32 = vadd.f32 %v3378_v61, %v712_v62 }
 0x174   : > { %v962_v17 = vpop.f32.mrf.mxu2  ;;  %v1092_v13 = vor.u32 1.1754944e-38, %v1091_v7  ;;  %vm1090_vm10 = vcmp.eq.f32.partialorder %v1089_v10, 8.507059e+37 }
 0x175   : > { %v963_v40 = vadd.f32 %v962_v17, %v898_v19  ;;  %v900_v44 = vpop.f32.mrf.mxu1  ;;  %v1068_v46 = vmul.f32 %v2492_v23, %v1067_v14  ;;  %v842_v53 = vadd.f32 %v3383_v37, %v777_v32 }
 0x176   : > { %v901_v6 = vadd.f32 %v900_v44, %v836_v49  ;;  %v650_v44 = vadd.f32 %v3289_v27, %v585_v26  ;;  %v850_v10 = vpop.f32.mrf.mxu0 }
 0x177   : > { %v2494_v12 = vpop.eup %2493  ;;  %v2325_v50 = vmul.f32 -1.442695, %v963_v40  ;;  %v1069_v41 = vadd.f32 %v2492_v23, %v1068_v46 }
 0x178   : > { %v2496_v55 = vpop.eup %2495  ;;  %v3389_v28 = vadd.f32 1.0, %v2494_v12  ;;  %v715_v61 = vadd.f32 %v3298_v33, %v650_v44 }
 0x179   : > { %2497 = vpow2.f32 %v2325_v50  ;;  %v1073_v57 = vsel %vm1072_vm4, %v2492_v23, %v1069_v41  ;;  %v1081_v18 = vmul.f32 %v2496_v55, %v3380_v59  ;;  %vm1086_vm7 = vweird.f32 %v2496_v55 }
 0x17a   : > { %2499 = vrcp.f32 %v3389_v28  ;;  %v1078_v2 = vsel %vm1075_vm6, %v1077_v39, %v1073_v57  ;;  %vm1087_vm9 = vmor %vm1085_vm8, %vm1086_vm7  ;;  %v1106_v19 = vand.u32 2147483648, %v3389_v28  ;;  %v1104_v40 = vand.u32 2147483647, %v3389_v28 }
 0x17b   : > { %2339 = vmatmul.msk.f32.vlgmr.msra.gmra.mxu3 %vm1310_vm5, %v1078_v2  ;;  %v1082_v25 = vsub.f32 1.0, %v1081_v18  ;;  %vm1100_vm12 = vweird.f32 %v3389_v28  ;;  %v780_v37 = vadd.f32 %v3391_v5, %v715_v61  ;;  %v785_v18 = vpop.f32.mrf.mxu3 }
 0x17c   : > { %v965_v63 = vpop.f32.mrf.mxu2  ;;  %v1107_v50 = vor.u32 1.1754944e-38, %v1106_v19  ;;  %vm1105_vm14 = vcmp.eq.f32.partialorder %v1104_v40, 8.507059e+37 }
 0x17d   : > { %v966_v11 = vadd.f32 %v965_v63, %v901_v6  ;;  %v903_v9 = vpop.f32.mrf.mxu1  ;;  %v1083_v43 = vmul.f32 %v2496_v55, %v1082_v25 }
 0x17e   : > { %v904_v59 = vadd.f32 %v903_v9, %v839_v58  ;;  %v845_v9 = vadd.f32 %v3400_v8, %v780_v37  ;;  %v783_v58 = vadd.f32 %v3411_v35, %v3307_v36 }
 0x17f   : > { %v2498_v52 = vpop.eup %2497  ;;  %v2326_v15 = vmul.f32 -1.442695, %v966_v11  ;;  %v1084_v30 = vadd.f32 %v2496_v55, %v1083_v43 }
 0x180   : > { %v2500_v45 = vpop.eup %2499  ;;  %v3407_v20 = vadd.f32 1.0, %v2498_v52 }
 0x181   : > { %2501 = vpow2.f32 %v2326_v15  ;;  %v1088_v23 = vsel %vm1087_vm9, %v2496_v55, %v1084_v30  ;;  %v1096_v29 = vmul.f32 %v2500_v45, %v3389_v28  ;;  %vm1101_vm11 = vweird.f32 %v2500_v45 }
 0x182   : > { %2503 = vrcp.f32 %v3407_v20  ;;  %v1093_v22 = vsel %vm1090_vm10, %v1092_v13, %v1088_v23  ;;  %vm1102_vm13 = vmor %vm1100_vm12, %vm1101_vm11  ;;  %v1121_v57 = vand.u32 2147483648, %v3407_v20  ;;  %v1119_v21 = vand.u32 2147483647, %v3407_v20 }
 0x183   : > { %2340 = vmatmul.msk.f32.gmra.mxu3 %vm1310_vm5, %v1093_v22  ;;  %v1097_v0 = vsub.f32 1.0, %v1096_v29  ;;  %vm1115_vm0 = vweird.f32 %v3407_v20 }
 0x184   : > { %v968_v14 = vpop.f32.mrf.mxu2  ;;  %v1122_v5 = vor.u32 1.1754944e-38, %v1121_v57  ;;  %vm1120_vm2 = vcmp.eq.f32.partialorder %v1119_v21, 8.507059e+37 }
 0x185   : > { %v969_v38 = vadd.f32 %v968_v14, %v904_v59  ;;  %v906_v17 = vpop.f32.mrf.mxu1  ;;  %v1098_v1 = vmul.f32 %v2500_v45, %v1097_v0  ;;  %v788_v59 = vpop.f32.mrf.mxu3  ;;  %v848_v14 = vadd.f32 %v3420_v34, %v783_v58 }
 0x186   : > { %v907_v28 = vadd.f32 %v906_v17, %v842_v53 }
 0x187   : > { %v2502_v46 = vpop.eup %2501  ;;  %v2327_v60 = vmul.f32 -1.442695, %v969_v38  ;;  %v1099_v12 = vadd.f32 %v2500_v45, %v1098_v1  ;;  %v853_v1 = vpop.f32.mrf.mxu0 }
 0x188   : > { %v2504_v48 = vpop.eup %2503  ;;  %v3425_v49 = vadd.f32 1.0, %v2502_v46  ;;  %v786_v46 = vadd.f32 %v785_v18, %v3314_v56 }
 0x189   : > { %2505 = vpow2.f32 %v2327_v60  ;;  %v1103_v41 = vsel %vm1102_vm13, %v2500_v45, %v1099_v12  ;;  %v1111_v27 = vmul.f32 %v2504_v48, %v3407_v20  ;;  %vm1116_vm15 = vweird.f32 %v2504_v48 }
 0x18a   : > { %2507 = vrcp.f32 %v3425_v49  ;;  %v1108_v55 = vsel %vm1105_vm14, %v1107_v50, %v1103_v41  ;;  %vm1117_vm1 = vmor %vm1115_vm0, %vm1116_vm15  ;;  %v1136_v8 = vand.u32 2147483648, %v3425_v49  ;;  %v1134_v29 = vand.u32 2147483647, %v3425_v49 }
 0x18b   : > { %2341 = vmatmul.msk.f32.gmra.mxu3 %vm1310_vm5, %v1108_v55  ;;  %v1112_v33 = vsub.f32 1.0, %v1111_v27  ;;  %vm1130_vm4 = vweird.f32 %v3425_v49  ;;  %v851_v55 = vadd.f32 %v850_v10, %v786_v46 }
 0x18c   : > { %v971_v39 = vpop.f32.mrf.mxu2  ;;  %v1137_v36 = vor.u32 1.1754944e-38, %v1136_v8  ;;  %vm1135_vm7 = vcmp.eq.f32.partialorder %v1134_v29, 8.507059e+37 }
 0x18d   : > { %v972_v2 = vadd.f32 %v971_v39, %v907_v28  ;;  %v909_v6 = vpop.f32.mrf.mxu1  ;;  %v1113_v25 = vmul.f32 %v2504_v48, %v1112_v33  ;;  %v791_v33 = vpop.f32.mrf.mxu3 }
 0x18e   : > { %v910_v30 = vadd.f32 %v909_v6, %v845_v9 }
 0x18f   : > { %v2506_v51 = vpop.eup %2505  ;;  %v2328_v63 = vmul.f32 -1.442695, %v972_v2  ;;  %v1114_v7 = vadd.f32 %v2504_v48, %v1113_v25  ;;  %v789_v2 = vadd.f32 %v788_v59, %v3322_v3  ;;  %v856_v21 = vpop.f32.mrf.mxu0 }
 0x190   : > { %v2508_v11 = vpop.eup %2507  ;;  %v1054_v43 = vadd.f32 1.0, %v2506_v51 }
 0x191   : > { %2509 = vpow2.f32 %v2328_v63  ;;  %v1118_v42 = vsel %vm1117_vm1, %v2504_v48, %v1114_v7  ;;  %v1126_v52 = vmul.f32 %v2508_v11, %v3425_v49  ;;  %vm1131_vm3 = vweird.f32 %v2508_v11 }
 0x192   : > { %2511 = vrcp.f32 %v1054_v43  ;;  %v1123_v15 = vsel %vm1120_vm2, %v1122_v5, %v1118_v42  ;;  %vm1132_vm6 = vmor %vm1130_vm4, %vm1131_vm3  ;;  %v1151_v12 = vand.u32 2147483648, %v1054_v43  ;;  %v1149_v61 = vand.u32 2147483647, %v1054_v43 }
 0x193   : > { %2342 = vmatmul.msk.f32.gmra.mxu3 %vm1310_vm5, %v1123_v15  ;;  %v1127_v45 = vsub.f32 1.0, %v1126_v52  ;;  %vm1145_vm9 = vweird.f32 %v1054_v43  ;;  %v854_v42 = vadd.f32 %v853_v1, %v789_v2 }
 0x194   : > { %v974_v62 = vpop.f32.mrf.mxu2  ;;  %v1152_v28 = vor.u32 1.1754944e-38, %v1151_v12  ;;  %vm1150_vm11 = vcmp.eq.f32.partialorder %v1149_v61, 8.507059e+37 }
 0x195   : > { %v975_v20 = vadd.f32 %v974_v62, %v910_v30  ;;  %v912_v13 = vpop.f32.mrf.mxu1  ;;  %v1128_v23 = vmul.f32 %v2508_v11, %v1127_v45  ;;  %v794_v58 = vpop.f32.mrf.mxu3 }
 0x196   : > { %v913_v40 = vadd.f32 %v912_v13, %v848_v14 }
 0x197   : > { %v2510_v22 = vpop.eup %2509  ;;  %v2329_v0 = vmul.f32 -1.442695, %v975_v20  ;;  %v1129_v26 = vadd.f32 %v2508_v11, %v1128_v23  ;;  %v792_v20 = vadd.f32 %v791_v33, %v3329_v16 }
 0x198   : > { %v2512_v32 = vpop.eup %2511  ;;  %v1055_v19 = vadd.f32 1.0, %v2510_v22 }
 0x199   : > { %2513 = vpow2.f32 %v2329_v0  ;;  %v1133_v35 = vsel %vm1132_vm6, %v2508_v11, %v1129_v26  ;;  %v1141_v38 = vmul.f32 %v2512_v32, %v1054_v43  ;;  %vm1146_vm8 = vweird.f32 %v2512_v32 }
 0x19a   : > { %2515 = vrcp.f32 %v1055_v19  ;;  %v1138_v17 = vsel %vm1135_vm7, %v1137_v36, %v1133_v35  ;;  %vm1147_vm10 = vmor %vm1145_vm9, %vm1146_vm8  ;;  %v1166_v25 = vand.u32 2147483648, %v1055_v19  ;;  %v1164_v11 = vand.u32 2147483647, %v1055_v19 }
 0x19b   : > { %2343 = vmatmul.msk.f32.gmra.mxu3 %vm1310_vm5, %v1138_v17  ;;  %v1142_v44 = vsub.f32 1.0, %v1141_v38  ;;  %vm1160_vm13 = vweird.f32 %v1055_v19  ;;  %v857_v35 = vadd.f32 %v856_v21, %v792_v20 }
 0x19c   : > { %v977_v60 = vpop.f32.mrf.mxu2  ;;  %v1167_v15 = vor.u32 1.1754944e-38, %v1166_v25  ;;  %vm1165_vm15 = vcmp.eq.f32.partialorder %v1164_v11, 8.507059e+37 }
 0x19d   : > { %v978_v48 = vadd.f32 %v977_v60, %v913_v40  ;;  %v915_v34 = vpop.f32.mrf.mxu1  ;;  %v1143_v53 = vmul.f32 %v2512_v32, %v1142_v44  ;;  %v795_v60 = vadd.f32 %v794_v58, %v3335_v31 }
 0x19e   : > { %v916_v57 = vadd.f32 %v915_v34, %v851_v55  ;;  %v797_v34 = vpop.f32.mrf.mxu3 }
 0x19f   : > { %v2514_v49 = vpop.eup %2513  ;;  %v2330_v50 = vmul.f32 -1.442695, %v978_v48  ;;  %v1144_v41 = vadd.f32 %v2512_v32, %v1143_v53 }
 0x1a0   : > { %v2516_v27 = vpop.eup %2515  ;;  %v1056_v54 = vadd.f32 1.0, %v2514_v49 }
 0x1a1   : > { %2517 = vpow2.f32 %v2330_v50  ;;  %v1148_v37 = vsel %vm1147_vm10, %v2512_v32, %v1144_v41  ;;  %v1156_v56 = vmul.f32 %v2516_v27, %v1055_v19  ;;  %vm1161_vm12 = vweird.f32 %v2516_v27  ;;  %v859_v32 = vpop.f32.mrf.mxu0 }
 0x1a2   : > { %2519 = vrcp.f32 %v1056_v54  ;;  %v1153_v39 = vsel %vm1150_vm11, %v1152_v28, %v1148_v37  ;;  %vm1162_vm14 = vmor %vm1160_vm13, %vm1161_vm12  ;;  %v1181_v23 = vand.u32 2147483648, %v1056_v54  ;;  %v1179_v0 = vand.u32 2147483647, %v1056_v54 }
 0x1a3   : > { %2344 = vmatmul.msk.f32.gmra.mxu3 %vm1310_vm5, %v1153_v39  ;;  %v1157_v18 = vsub.f32 1.0, %v1156_v56  ;;  %vm1175_vm1 = vweird.f32 %v1056_v54  ;;  %v860_v28 = vadd.f32 %v859_v32, %v795_v60 }
 0x1a4   : > { %v980_v6 = vpop.f32.mrf.mxu2  ;;  %v1182_v17 = vor.u32 1.1754944e-38, %v1181_v23  ;;  %vm1180_vm3 = vcmp.eq.f32.partialorder %v1179_v0, 8.507059e+37 }
 0x1a5   : > { %v981_v51 = vadd.f32 %v980_v6, %v916_v57  ;;  %v918_v63 = vpop.f32.mrf.mxu1  ;;  %v1158_v7 = vmul.f32 %v2516_v27, %v1157_v18  ;;  %v798_v6 = vadd.f32 %v797_v34, %v3341_v47 }
 0x1a6   : > { %v919_v62 = vadd.f32 %v918_v63, %v854_v42 }
 0x1a7   : > { %v2518_v9 = vpop.eup %2517  ;;  %v2331_v43 = vmul.f32 -1.442695, %v981_v51  ;;  %v1159_v5 = vadd.f32 %v2516_v27, %v1158_v7 }
 0x1a8   : > { %v2520_v10 = vpop.eup %2519  ;;  %v1057_v52 = vadd.f32 1.0, %v2518_v9 }
 0x1a9   : > { %2521 = vpow2.f32 %v2331_v43  ;;  %v1163_v30 = vsel %vm1162_vm14, %v2516_v27, %v1159_v5  ;;  %v1171_v3 = vmul.f32 %v2520_v10, %v1056_v54  ;;  %vm1176_vm0 = vweird.f32 %v2520_v10  ;;  %v862_v56 = vpop.f32.mrf.mxu0  ;;  %v800_v43 = vpop.f32.mrf.mxu3 }
 0x1aa   : > { %2523 = vrcp.f32 %v1057_v52  ;;  %v1168_v45 = vsel %vm1165_vm15, %v1167_v15, %v1163_v30  ;;  %vm1177_vm2 = vmor %vm1175_vm1, %vm1176_vm0  ;;  %v1196_v48 = vand.u32 2147483648, %v1057_v52  ;;  %v1194_v50 = vand.u32 2147483647, %v1057_v52 }
 0x1ab   : > { %2345 = vmatmul.msk.f32.gmra.mxu3 %vm1310_vm5, %v1168_v45  ;;  %v1172_v8 = vsub.f32 1.0, %v1171_v3  ;;  %vm1190_vm6 = vweird.f32 %v1057_v52  ;;  %v801_v20 = vadd.f32 %v800_v43, %v3350_v4 }
 0x1ac   : > { %v983_v13 = vpop.f32.mrf.mxu2  ;;  %v1197_v37 = vor.u32 1.1754944e-38, %v1196_v48  ;;  %vm1195_vm8 = vcmp.eq.f32.partialorder %v1194_v50, 8.507059e+37 }
 0x1ad   : > { %v984_v29 = vadd.f32 %v983_v13, %v919_v62  ;;  %v921_v22 = vpop.f32.mrf.mxu1  ;;  %v1173_v59 = vmul.f32 %v2520_v10, %v1172_v8 }
 0x1ae   : > { %v922_v44 = vadd.f32 %v921_v22, %v857_v35 }
 0x1af   : > { %v2522_v26 = vpop.eup %2521  ;;  %v2332_v14 = vmul.f32 -1.442695, %v984_v29  ;;  %v1174_v19 = vadd.f32 %v2520_v10, %v1173_v59 }
 0x1b0   : > { %v2524_v36 = vpop.eup %2523  ;;  %v1058_v38 = vadd.f32 1.0, %v2522_v26 }
 0x1b1   : > { %2525 = vpow2.f32 %v2332_v14  ;;  %v1178_v1 = vsel %vm1177_vm2, %v2520_v10, %v1174_v19  ;;  %v1186_v16 = vmul.f32 %v2524_v36, %v1057_v52  ;;  %vm1191_vm4 = vweird.f32 %v2524_v36  ;;  %v865_v58 = vpop.f32.mrf.mxu0 }
 0x1b2   : > { %2527 = vrcp.f32 %v1058_v38  ;;  %v1183_v40 = vsel %vm1180_vm3, %v1182_v17, %v1178_v1  ;;  %vm1192_vm7 = vmor %vm1190_vm6, %vm1191_vm4  ;;  %v1211_v21 = vand.u32 2147483648, %v1058_v38  ;;  %v1209_v11 = vand.u32 2147483647, %v1058_v38  ;;  %v803_v17 = vpop.f32.mrf.mxu3 }
 0x1b3   : > { %2346 = vmatmul.msk.f32.gmra.mxu3 %vm1310_vm5, %v1183_v40  ;;  %v1187_v46 = vsub.f32 1.0, %v1186_v16  ;;  %vm1205_vm10 = vweird.f32 %v1058_v38  ;;  %v863_v52 = vadd.f32 %v862_v56, %v798_v6 }
 0x1b4   : > { %v986_v12 = vpop.f32.mrf.mxu2  ;;  %v1212_v30 = vor.u32 1.1754944e-38, %v1211_v21  ;;  %vm1210_vm12 = vcmp.eq.f32.partialorder %v1209_v11, 8.507059e+37 }
 0x1b5   : > { %v987_v53 = vadd.f32 %v986_v12, %v922_v44  ;;  %v924_v61 = vpop.f32.mrf.mxu1  ;;  %v1188_v49 = vmul.f32 %v2524_v36, %v1187_v46  ;;  %v804_v46 = vadd.f32 %v803_v17, %v3359_v24 }
 0x1b6   : > { %v925_v18 = vadd.f32 %v924_v61, %v860_v28 }
 0x1b7   : > { %v2526_v41 = vpop.eup %2525  ;;  %v2333_v27 = vmul.f32 -1.442695, %v987_v53  ;;  %v1189_v55 = vadd.f32 %v2524_v36, %v1188_v49 }
 0x1b8   : > { %v2528_v54 = vpop.eup %2527  ;;  %v1059_v33 = vadd.f32 1.0, %v2526_v41 }
 0x1b9   : > { %2529 = vpow2.f32 %v2333_v27  ;;  %v1193_v31 = vsel %vm1192_vm7, %v2524_v36, %v1189_v55  ;;  %v1201_v39 = vmul.f32 %v2528_v54, %v1058_v38  ;;  %vm1206_vm9 = vweird.f32 %v2528_v54  ;;  %v868_v48 = vpop.f32.mrf.mxu0 }
 0x1ba   : > { %2531 = vrcp.f32 %v1059_v33  ;;  %v1198_v57 = vsel %vm1195_vm8, %v1197_v37, %v1193_v31  ;;  %vm1207_vm11 = vmor %vm1205_vm10, %vm1206_vm9  ;;  %v1226_v23 = vand.u32 2147483648, %v1059_v33  ;;  %v1224_v59 = vand.u32 2147483647, %v1059_v33 }
 0x1bb   : > { %2347 = vmatmul.msk.f32.gmra.mxu3 %vm1310_vm5, %v1198_v57  ;;  %v1202_v2 = vsub.f32 1.0, %v1201_v39  ;;  %vm1220_vm14 = vweird.f32 %v1059_v33  ;;  %v866_v36 = vadd.f32 %v865_v58, %v801_v20  ;;  %v869_v55 = vadd.f32 %v868_v48, %v804_v46  ;;  %v3469_v46 = vld [vmem:[%s3673_s4] ss:$0 sm:$0xff] }
 0x1bc   : > { %v989_v25 = vpop.f32.mrf.mxu2  ;;  %v1227_v38 = vor.u32 1.1754944e-38, %v1226_v23  ;;  %vm1225_vm0 = vcmp.eq.f32.partialorder %v1224_v59, 8.507059e+37 }
 0x1bd   : > { %v990_v51 = vadd.f32 %v989_v25, %v925_v18  ;;  %v927_v63 = vpop.f32.mrf.mxu1  ;;  %v1203_v7 = vmul.f32 %v2528_v54, %v1202_v2 }
 0x1be   : > { %v928_v62 = vadd.f32 %v927_v63, %v863_v52 }
 0x1bf   : > { %v2530_v9 = vpop.eup %2529  ;;  %v2334_v5 = vmul.f32 -1.442695, %v990_v51  ;;  %v1204_v10 = vadd.f32 %v2528_v54, %v1203_v7 }
 0x1c0   : > { %v2532_v42 = vpop.eup %2531  ;;  %v1060_v15 = vadd.f32 1.0, %v2530_v9 }
 0x1c1   : > { %2533 = vpow2.f32 %v2334_v5  ;;  %v1208_v3 = vsel %vm1207_vm11, %v2528_v54, %v1204_v10  ;;  %v1216_v47 = vmul.f32 %v2532_v42, %v1059_v33  ;;  %vm1221_vm13 = vweird.f32 %v2532_v42 }
 0x1c2   : > { %2535 = vrcp.f32 %v1060_v15  ;;  %v1213_v45 = vsel %vm1210_vm12, %v1212_v30, %v1208_v3  ;;  %vm1222_vm15 = vmor %vm1220_vm14, %vm1221_vm13  ;;  %v1241_v12 = vand.u32 2147483648, %v1060_v15  ;;  %v1239_v61 = vand.u32 2147483647, %v1060_v15 }
 0x1c3   : > { %2348 = vmatmul.msk.f32.gmra.mxu3 %vm1310_vm5, %v1213_v45  ;;  %v1217_v8 = vsub.f32 1.0, %v1216_v47  ;;  %vm1235_vm2 = vweird.f32 %v1060_v15 }
 0x1c4   : > { %v992_v13 = vpop.f32.mrf.mxu2  ;;  %v1242_v33 = vor.u32 1.1754944e-38, %v1241_v12  ;;  %vm1240_vm4 = vcmp.eq.f32.partialorder %v1239_v61, 8.507059e+37 }
 0x1c5   : > { %v993_v29 = vadd.f32 %v992_v13, %v928_v62  ;;  %v1218_v22 = vmul.f32 %v2532_v42, %v1217_v8  ;;  %v930_v0 = vpop.f32.mrf.mxu1 }
 0x1c6   : > { %v931_v40 = vadd.f32 %v930_v0, %v866_v36 }
 0x1c7   : > { %v2534_v26 = vpop.eup %2533  ;;  %v2335_v32 = vmul.f32 -1.442695, %v993_v29  ;;  %v1219_v14 = vadd.f32 %v2532_v42, %v1218_v22 }
 0x1c8   : > { %v2536_v19 = vpop.eup %2535  ;;  %v1061_v35 = vadd.f32 1.0, %v2534_v26 }
 0x1c9   : > { %2537 = vpow2.f32 %v2335_v32  ;;  %v1223_v1 = vsel %vm1222_vm15, %v2532_v42, %v1219_v14  ;;  %v1231_v4 = vmul.f32 %v2536_v19, %v1060_v15  ;;  %vm1236_vm1 = vweird.f32 %v2536_v19 }
 0x1ca   : > { %2539 = vrcp.f32 %v1061_v35  ;;  %v1228_v16 = vsel %vm1225_vm0, %v1227_v38, %v1223_v1  ;;  %vm1237_vm3 = vmor %vm1235_vm2, %vm1236_vm1  ;;  %v1256_v18 = vand.u32 2147483648, %v1061_v35  ;;  %v1254_v25 = vand.u32 2147483647, %v1061_v35 }
 0x1cb   : > { %2349 = vmatmul.msk.f32.gmra.mxu3 %vm1310_vm5, %v1228_v16  ;;  %v1232_v44 = vsub.f32 1.0, %v1231_v4  ;;  %vm1250_vm7 = vweird.f32 %v1061_v35 }
 0x1cc   : > { %v995_v60 = vpop.f32.mrf.mxu2  ;;  %v1257_v9 = vor.u32 1.1754944e-38, %v1256_v18  ;;  %vm1255_vm9 = vcmp.eq.f32.partialorder %v1254_v25, 8.507059e+37 }
 0x1cd   : > { %v996_v34 = vadd.f32 %v995_v60, %v931_v40  ;;  %v1233_v53 = vmul.f32 %v2536_v19, %v1232_v44  ;;  %v933_v28 = vpop.f32.mrf.mxu1 }
 0x1ce   : > { %v934_v31 = vadd.f32 %v933_v28, %v869_v55 }
 0x1cf   : > { %v2538_v49 = vpop.eup %2537  ;;  %v2336_v50 = vmul.f32 -1.442695, %v996_v34  ;;  %v1234_v41 = vadd.f32 %v2536_v19, %v1233_v53 }
 0x1d0   : > { %v2540_v27 = vpop.eup %2539  ;;  %v1062_v54 = vadd.f32 1.0, %v2538_v49 }
 0x1d1   : > { %2541 = vpow2.f32 %v2336_v50  ;;  %v1238_v37 = vsel %vm1237_vm3, %v2536_v19, %v1234_v41  ;;  %v1246_v24 = vmul.f32 %v2540_v27, %v1061_v35  ;;  %vm1251_vm6 = vweird.f32 %v2540_v27 }
 0x1d2   : > { %2543 = vrcp.f32 %v1062_v54  ;;  %v1243_v56 = vsel %vm1240_vm4, %v1242_v33, %v1238_v37  ;;  %vm1252_vm8 = vmor %vm1250_vm7, %vm1251_vm6  ;;  %v1271_v52 = vand.u32 2147483648, %v1062_v54  ;;  %v1269_v30 = vand.u32 2147483647, %v1062_v54 }
 0x1d3   : > { %2350 = vmatmul.msk.f32.gmra.mxu3 %vm1310_vm5, %v1243_v56  ;;  %v1247_v39 = vsub.f32 1.0, %v1246_v24  ;;  %vm1265_vm11 = vweird.f32 %v1062_v54 }
 0x1d4   : > { %v998_v57 = vpop.f32.mrf.mxu2  ;;  %v1272_v62 = vor.u32 1.1754944e-38, %v1271_v52  ;;  %vm1270_vm13 = vcmp.eq.f32.partialorder %v1269_v30, 8.507059e+37 }
 0x1d5   : > { %v999_v2 = vadd.f32 %v998_v57, %v934_v31  ;;  %v1248_v6 = vmul.f32 %v2540_v27, %v1247_v39 }
 0x1d7   : > { %v2542_v21 = vpop.eup %2541  ;;  %v2337_v51 = vmul.f32 -1.442695, %v999_v2  ;;  %v1249_v63 = vadd.f32 %v2540_v27, %v1248_v6 }
 0x1d8   : > { %v2544_v7 = vpop.eup %2543  ;;  %v1063_v11 = vadd.f32 1.0, %v2542_v21 }
 0x1d9   : > { %2545 = vpow2.f32 %v2337_v51  ;;  %v1253_v43 = vsel %vm1252_vm8, %v2540_v27, %v1249_v63  ;;  %v1261_v5 = vmul.f32 %v2544_v7, %v1062_v54  ;;  %vm1266_vm10 = vweird.f32 %v2544_v7 }
 0x1da   : > { %2547 = vrcp.f32 %v1063_v11  ;;  %v1258_v10 = vsel %vm1255_vm9, %v1257_v9, %v1253_v43  ;;  %vm1267_vm12 = vmor %vm1265_vm11, %vm1266_vm10  ;;  %v1286_v29 = vand.u32 2147483648, %v1063_v11  ;;  %v1284_v59 = vand.u32 2147483647, %v1063_v11 }
 0x1db   : > { %2351 = vmatmul.msk.f32.gmra.mxu3 %vm1310_vm5, %v1258_v10  ;;  %v1262_v42 = vsub.f32 1.0, %v1261_v5  ;;  %vm1280_vm15 = vweird.f32 %v1063_v11 }
 0x1dc   : > { %v1287_v32 = vor.u32 1.1754944e-38, %v1286_v29  ;;  %vm1285_vm1 = vcmp.eq.f32.partialorder %v1284_v59, 8.507059e+37 }
 0x1dd   : > { %v1263_v15 = vmul.f32 %v2544_v7, %v1262_v42 }
 0x1df   : > { %v2546_v3 = vpop.eup %2545  ;;  %v1264_v47 = vadd.f32 %v2544_v7, %v1263_v15 }
 0x1e0   : > { %v2548_v45 = vpop.eup %2547  ;;  %v1064_v58 = vadd.f32 1.0, %v2546_v3 }
 0x1e1   : > { %v1268_v8 = vsel %vm1267_vm12, %v2544_v7, %v1264_v47  ;;  %v1276_v20 = vmul.f32 %v2548_v45, %v1063_v11  ;;  %vm1281_vm14 = vweird.f32 %v2548_v45 }
 0x1e2   : > { %2549 = vrcp.f32 %v1064_v58  ;;  %v1273_v13 = vsel %vm1270_vm13, %v1272_v62, %v1268_v8  ;;  %vm1282_vm0 = vmor %vm1280_vm15, %vm1281_vm14  ;;  %v1301_v38 = vand.u32 2147483648, %v1064_v58  ;;  %v1299_v1 = vand.u32 2147483647, %v1064_v58 }
 0x1e3   : > { %2352 = vmatmul.msk.f32.gmra.mxu3 %vm1310_vm5, %v1273_v13  ;;  %v1277_v23 = vsub.f32 1.0, %v1276_v20  ;;  %vm1295_vm3 = vweird.f32 %v1064_v58 }
 0x1e4   : > { %v1302_v16 = vor.u32 1.1754944e-38, %v1301_v38  ;;  %vm1300_vm6 = vcmp.eq.f32.partialorder %v1299_v1, 8.507059e+37 }
 0x1e5   : > { %v1278_v22 = vmul.f32 %v2548_v45, %v1277_v23 }
 0x1e7   : > { %v1279_v0 = vadd.f32 %v2548_v45, %v1278_v22 }
 0x1e8   : > { %v2550_v26 = vpop.eup %2549 }
 0x1e9   : > { %v1283_v14 = vsel %vm1282_vm0, %v2548_v45, %v1279_v0  ;;  %v1291_v19 = vmul.f32 %v2550_v26, %v1064_v58  ;;  %vm1296_vm2 = vweird.f32 %v2550_v26 }
 0x1ea   : > { %v1288_v36 = vsel %vm1285_vm1, %v1287_v32, %v1283_v14  ;;  %vm1297_vm4 = vmor %vm1295_vm3, %vm1296_vm2 }
 0x1eb   : > { %2353 = vmatmul.msk.f32.gmra.mxu3 %vm1310_vm5, %v1288_v36  ;;  %v1292_v35 = vsub.f32 1.0, %v1291_v19 }
 0x1ed   : > { %v1293_v17 = vmul.f32 %v2550_v26, %v1292_v35 }
 0x1ef   : > { %v1294_v4 = vadd.f32 %v2550_v26, %v1293_v17 }
 0x1f1   : > { %v1298_v40 = vsel %vm1297_vm4, %v2550_v26, %v1294_v4 }
 0x1f2   : > { %v1303_v44 = vsel %vm1300_vm6, %v1302_v16, %v1298_v40 }
 0x1f3   : > { %2354 = vmatmul.msk.f32.gmra.mxu3 %vm1310_vm5, %v1303_v44 }
 0x1fe   : > { %v1380_v60 = vpop.f32.mrf.mxu3 }
 0x1ff   : > { %v1381_v12 = vadd.f32 %v3469_v46, %v1380_v60 }
 0x201   : > { %v2355_v48 = vmul.f32 -1.442695, %v1381_v12 }
 0x203   : > { %2551 = vpow2.f32 %v2355_v48 }
 0x206   : > { %v1383_v34 = vpop.f32.mrf.mxu3 }
 0x207   : > { %v1384_v53 = vadd.f32 %v3469_v46, %v1383_v34 }
 0x209   : > { %v2552_v61 = vpop.eup %2551  ;;  %v2356_v49 = vmul.f32 -1.442695, %v1384_v53 }
 0x20a   : > { %v1476_v50 = vadd.f32 1.0, %v2552_v61 }
 0x20b   : > { %2553 = vpow2.f32 %v2356_v49 }
 0x20c   : > { %2555 = vrcp.f32 %v1476_v50  ;;  %v1503_v31 = vand.u32 2147483648, %v1476_v50  ;;  %v1501_v18 = vand.u32 2147483647, %v1476_v50  ;;  %vm1497_vm8 = vweird.f32 %v1476_v50 }
 0x20e   : > { %v1386_v41 = vpop.f32.mrf.mxu3  ;;  %v1504_v63 = vor.u32 1.1754944e-38, %v1503_v31  ;;  %vm1502_vm10 = vcmp.eq.f32.partialorder %v1501_v18, 8.507059e+37 }
 0x20f   : > { %v1387_v27 = vadd.f32 %v3469_v46, %v1386_v41 }
 0x211   : > { %v2554_v55 = vpop.eup %2553  ;;  %v2357_v54 = vmul.f32 -1.442695, %v1387_v27 }
 0x212   : > { %v2556_v28 = vpop.eup %2555  ;;  %v1477_v33 = vadd.f32 1.0, %v2554_v55 }
 0x213   : > { %v1493_v37 = vmul.f32 %v2556_v28, %v1476_v50  ;;  %2557 = vpow2.f32 %v2357_v54  ;;  %vm1498_vm7 = vweird.f32 %v2556_v28 }
 0x214   : > { %2559 = vrcp.f32 %v1477_v33  ;;  %vm1499_vm9 = vmor %vm1497_vm8, %vm1498_vm7  ;;  %v1518_v10 = vand.u32 2147483648, %v1477_v33  ;;  %v1516_v15 = vand.u32 2147483647, %v1477_v33  ;;  %vm1512_vm12 = vweird.f32 %v1477_v33 }
 0x215   : > { %v1494_v24 = vsub.f32 1.0, %v1493_v37 }
 0x216   : > { %v1389_v56 = vpop.f32.mrf.mxu3  ;;  %v1519_v62 = vor.u32 1.1754944e-38, %v1518_v10  ;;  %vm1517_vm14 = vcmp.eq.f32.partialorder %v1516_v15, 8.507059e+37 }
 0x217   : > { %v1390_v39 = vadd.f32 %v3469_v46, %v1389_v56  ;;  %v1495_v57 = vmul.f32 %v2556_v28, %v1494_v24 }
 0x219   : > { %v2558_v2 = vpop.eup %2557  ;;  %v2358_v6 = vmul.f32 -1.442695, %v1390_v39  ;;  %v1496_v25 = vadd.f32 %v2556_v28, %v1495_v57 }
 0x21a   : > { %v2560_v21 = vpop.eup %2559  ;;  %v1478_v51 = vadd.f32 1.0, %v2558_v2 }
 0x21b   : > { %2561 = vpow2.f32 %v2358_v6  ;;  %v1500_v7 = vsel %vm1499_vm9, %v2556_v28, %v1496_v25  ;;  %v1508_v11 = vmul.f32 %v2560_v21, %v1477_v33  ;;  %vm1513_vm11 = vweird.f32 %v2560_v21 }
 0x21c   : > { %2563 = vrcp.f32 %v1478_v51  ;;  %v1505_v9 = vsel %vm1502_vm10, %v1504_v63, %v1500_v7  ;;  %vm1514_vm13 = vmor %vm1512_vm12, %vm1513_vm11  ;;  %v1533_v22 = vand.u32 2147483648, %v1478_v51  ;;  %v1531_v26 = vand.u32 2147483647, %v1478_v51 }
 0x21d   : > { %2372 = vmatmul.msk.f32.vlgmr.msra.gmra.mxu0 %vm1310_vm5, %v1505_v9  ;;  %v1509_v43 = vsub.f32 1.0, %v1508_v11  ;;  %vm1527_vm0 = vweird.f32 %v1478_v51 }
 0x21e   : > { %v1392_v5 = vpop.f32.mrf.mxu3  ;;  %v1534_v38 = vor.u32 1.1754944e-38, %v1533_v22  ;;  %vm1532_vm2 = vcmp.eq.f32.partialorder %v1531_v26, 8.507059e+37 }
 0x21f   : > { %v1393_v42 = vadd.f32 %v3469_v46, %v1392_v5  ;;  %v1510_v52 = vmul.f32 %v2560_v21, %v1509_v43 }
 0x221   : > { %v2562_v30 = vpop.eup %2561  ;;  %v2359_v3 = vmul.f32 -1.442695, %v1393_v42  ;;  %v1511_v47 = vadd.f32 %v2560_v21, %v1510_v52 }
 0x222   : > { %v2564_v45 = vpop.eup %2563  ;;  %v1479_v58 = vadd.f32 1.0, %v2562_v30 }
 0x223   : > { %2565 = vpow2.f32 %v2359_v3  ;;  %v1515_v8 = vsel %vm1514_vm13, %v2560_v21, %v1511_v47  ;;  %v1523_v20 = vmul.f32 %v2564_v45, %v1478_v51  ;;  %vm1528_vm15 = vweird.f32 %v2564_v45 }
 0x224   : > { %2567 = vrcp.f32 %v1479_v58  ;;  %v1520_v13 = vsel %vm1517_vm14, %v1519_v62, %v1515_v8  ;;  %vm1529_vm1 = vmor %vm1527_vm0, %vm1528_vm15  ;;  %v1548_v44 = vand.u32 2147483648, %v1479_v58  ;;  %v1546_v48 = vand.u32 2147483647, %v1479_v58 }
 0x225   : > { %2373 = vmatmul.msk.f32.gmra.mxu0 %vm1310_vm5, %v1520_v13  ;;  %v1524_v23 = vsub.f32 1.0, %v1523_v20  ;;  %vm1542_vm4 = vweird.f32 %v1479_v58 }
 0x226   : > { %v1395_v29 = vpop.f32.mrf.mxu3  ;;  %v1549_v41 = vor.u32 1.1754944e-38, %v1548_v44  ;;  %vm1547_vm7 = vcmp.eq.f32.partialorder %v1546_v48, 8.507059e+37 }
 0x227   : > { %v1396_v59 = vadd.f32 %v3469_v46, %v1395_v29  ;;  %v1525_v0 = vmul.f32 %v2564_v45, %v1524_v23 }
 0x229   : > { %v2566_v32 = vpop.eup %2565  ;;  %v2360_v14 = vmul.f32 -1.442695, %v1396_v59  ;;  %v1526_v19 = vadd.f32 %v2564_v45, %v1525_v0 }
 0x22a   : > { %v2568_v36 = vpop.eup %2567  ;;  %v1480_v35 = vadd.f32 1.0, %v2566_v32 }
 0x22b   : > { %2569 = vpow2.f32 %v2360_v14  ;;  %v1530_v17 = vsel %vm1529_vm1, %v2564_v45, %v1526_v19  ;;  %v1538_v1 = vmul.f32 %v2568_v36, %v1479_v58  ;;  %vm1543_vm3 = vweird.f32 %v2568_v36 }
 0x22c   : > { %2571 = vrcp.f32 %v1480_v35  ;;  %v1535_v4 = vsel %vm1532_vm2, %v1534_v38, %v1530_v17  ;;  %vm1544_vm6 = vmor %vm1542_vm4, %vm1543_vm3  ;;  %v1563_v37 = vand.u32 2147483648, %v1480_v35  ;;  %v1561_v31 = vand.u32 2147483647, %v1480_v35 }
 0x22d   : > { %2374 = vmatmul.msk.f32.gmra.mxu0 %vm1310_vm5, %v1535_v4  ;;  %v1539_v16 = vsub.f32 1.0, %v1538_v1  ;;  %vm1557_vm9 = vweird.f32 %v1480_v35 }
 0x22e   : > { %v1398_v40 = vpop.f32.mrf.mxu3  ;;  %v1564_v25 = vor.u32 1.1754944e-38, %v1563_v37  ;;  %vm1562_vm11 = vcmp.eq.f32.partialorder %v1561_v31, 8.507059e+37 }
 0x22f   : > { %v1399_v60 = vadd.f32 %v3469_v46, %v1398_v40  ;;  %v1540_v12 = vmul.f32 %v2568_v36, %v1539_v16 }
 0x231   : > { %v2570_v34 = vpop.eup %2569  ;;  %v2361_v53 = vmul.f32 -1.442695, %v1399_v60  ;;  %v1541_v61 = vadd.f32 %v2568_v36, %v1540_v12 }
 0x232   : > { %v2572_v49 = vpop.eup %2571  ;;  %v1481_v50 = vadd.f32 1.0, %v2570_v34 }
 0x233   : > { %2573 = vpow2.f32 %v2361_v53  ;;  %v1545_v27 = vsel %vm1544_vm6, %v2568_v36, %v1541_v61  ;;  %v1553_v55 = vmul.f32 %v2572_v49, %v1480_v35  ;;  %vm1558_vm8 = vweird.f32 %v2572_v49 }
 0x234   : > { %2575 = vrcp.f32 %v1481_v50  ;;  %v1550_v54 = vsel %vm1547_vm7, %v1549_v41, %v1545_v27  ;;  %vm1559_vm10 = vmor %vm1557_vm9, %vm1558_vm8  ;;  %v1578_v9 = vand.u32 2147483648, %v1481_v50  ;;  %v1576_v10 = vand.u32 2147483647, %v1481_v50 }
 0x235   : > { %2375 = vmatmul.msk.f32.gmra.mxu0 %vm1310_vm5, %v1550_v54  ;;  %v1554_v28 = vsub.f32 1.0, %v1553_v55  ;;  %vm1572_vm13 = vweird.f32 %v1481_v50 }
 0x236   : > { %v1401_v33 = vpop.f32.mrf.mxu3  ;;  %v1579_v47 = vor.u32 1.1754944e-38, %v1578_v9  ;;  %vm1577_vm15 = vcmp.eq.f32.partialorder %v1576_v10, 8.507059e+37 }
 0x237   : > { %v1402_v24 = vadd.f32 %v3469_v46, %v1401_v33  ;;  %v1555_v56 = vmul.f32 %v2572_v49, %v1554_v28 }
 0x239   : > { %v2574_v39 = vpop.eup %2573  ;;  %v2362_v57 = vmul.f32 -1.442695, %v1402_v24  ;;  %v1556_v18 = vadd.f32 %v2572_v49, %v1555_v56 }
 0x23a   : > { %v2576_v2 = vpop.eup %2575  ;;  %v1482_v6 = vadd.f32 1.0, %v2574_v39 }
 0x23b   : > { %2577 = vpow2.f32 %v2362_v57  ;;  %v1560_v21 = vsel %vm1559_vm10, %v2572_v49, %v1556_v18  ;;  %v1568_v51 = vmul.f32 %v2576_v2, %v1481_v50  ;;  %vm1573_vm12 = vweird.f32 %v2576_v2 }
 0x23c   : > { %2579 = vrcp.f32 %v1482_v6  ;;  %v1565_v63 = vsel %vm1562_vm11, %v1564_v25, %v1560_v21  ;;  %vm1574_vm14 = vmor %vm1572_vm13, %vm1573_vm12  ;;  %v1593_v13 = vand.u32 2147483648, %v1482_v6  ;;  %v1591_v22 = vand.u32 2147483647, %v1482_v6 }
 0x23d   : > { %2376 = vmatmul.msk.f32.gmra.mxu0 %vm1310_vm5, %v1565_v63  ;;  %v1569_v7 = vsub.f32 1.0, %v1568_v51  ;;  %vm1587_vm1 = vweird.f32 %v1482_v6 }
 0x23e   : > { %v1404_v11 = vpop.f32.mrf.mxu3  ;;  %v1594_v19 = vor.u32 1.1754944e-38, %v1593_v13  ;;  %vm1592_vm3 = vcmp.eq.f32.partialorder %v1591_v22, 8.507059e+37 }
 0x23f   : > { %v1405_v43 = vadd.f32 %v3469_v46, %v1404_v11  ;;  %v1570_v5 = vmul.f32 %v2576_v2, %v1569_v7 }
 0x241   : > { %v2578_v42 = vpop.eup %2577  ;;  %v2363_v52 = vmul.f32 -1.442695, %v1405_v43  ;;  %v1571_v15 = vadd.f32 %v2576_v2, %v1570_v5 }
 0x242   : > { %v2580_v30 = vpop.eup %2579  ;;  %v1483_v3 = vadd.f32 1.0, %v2578_v42 }
 0x243   : > { %2581 = vpow2.f32 %v2363_v52  ;;  %v1575_v45 = vsel %vm1574_vm14, %v2576_v2, %v1571_v15  ;;  %v1583_v58 = vmul.f32 %v2580_v30, %v1482_v6  ;;  %vm1588_vm0 = vweird.f32 %v2580_v30 }
 0x244   : > { %2583 = vrcp.f32 %v1483_v3  ;;  %v1580_v62 = vsel %vm1577_vm15, %v1579_v47, %v1575_v45  ;;  %vm1589_vm2 = vmor %vm1587_vm1, %vm1588_vm0  ;;  %v1608_v4 = vand.u32 2147483648, %v1483_v3  ;;  %v1606_v44 = vand.u32 2147483647, %v1483_v3 }
 0x245   : > { %2377 = vmatmul.msk.f32.gmra.mxu0 %vm1310_vm5, %v1580_v62  ;;  %v1584_v8 = vsub.f32 1.0, %v1583_v58  ;;  %vm1602_vm6 = vweird.f32 %v1483_v3 }
 0x246   : > { %v1407_v20 = vpop.f32.mrf.mxu3  ;;  %v1609_v61 = vor.u32 1.1754944e-38, %v1608_v4  ;;  %vm1607_vm8 = vcmp.eq.f32.partialorder %v1606_v44, 8.507059e+37 }
 0x247   : > { %v1408_v23 = vadd.f32 %v3469_v46, %v1407_v20  ;;  %v1585_v29 = vmul.f32 %v2580_v30, %v1584_v8 }
 0x249   : > { %v2582_v59 = vpop.eup %2581  ;;  %v2364_v0 = vmul.f32 -1.442695, %v1408_v23  ;;  %v1586_v26 = vadd.f32 %v2580_v30, %v1585_v29 }
 0x24a   : > { %v2584_v32 = vpop.eup %2583  ;;  %v1484_v14 = vadd.f32 1.0, %v2582_v59 }
 0x24b   : > { %2585 = vpow2.f32 %v2364_v0  ;;  %v1590_v36 = vsel %vm1589_vm2, %v2580_v30, %v1586_v26  ;;  %v1598_v35 = vmul.f32 %v2584_v32, %v1483_v3  ;;  %vm1603_vm4 = vweird.f32 %v2584_v32 }
 0x24c   : > { %2587 = vrcp.f32 %v1484_v14  ;;  %v1595_v38 = vsel %vm1592_vm3, %v1594_v19, %v1590_v36  ;;  %vm1604_vm7 = vmor %vm1602_vm6, %vm1603_vm4  ;;  %v1623_v54 = vand.u32 2147483648, %v1484_v14  ;;  %v1621_v37 = vand.u32 2147483647, %v1484_v14 }
 0x24d   : > { %2378 = vmatmul.msk.f32.gmra.mxu0 %vm1310_vm5, %v1595_v38  ;;  %v1599_v17 = vsub.f32 1.0, %v1598_v35  ;;  %vm1617_vm10 = vweird.f32 %v1484_v14 }
 0x24e   : > { %v1410_v1 = vpop.f32.mrf.mxu3  ;;  %v1624_v18 = vor.u32 1.1754944e-38, %v1623_v54  ;;  %vm1622_vm12 = vcmp.eq.f32.partialorder %v1621_v37, 8.507059e+37 }
 0x24f   : > { %v1411_v16 = vadd.f32 %v3469_v46, %v1410_v1  ;;  %v1600_v40 = vmul.f32 %v2584_v32, %v1599_v17 }
 0x251   : > { %v2586_v60 = vpop.eup %2585  ;;  %v2365_v12 = vmul.f32 -1.442695, %v1411_v16  ;;  %v1601_v48 = vadd.f32 %v2584_v32, %v1600_v40 }
 0x252   : > { %v2588_v34 = vpop.eup %2587  ;;  %v1485_v53 = vadd.f32 1.0, %v2586_v60 }
 0x253   : > { %2589 = vpow2.f32 %v2365_v12  ;;  %v1605_v49 = vsel %vm1604_vm7, %v2584_v32, %v1601_v48  ;;  %v1613_v50 = vmul.f32 %v2588_v34, %v1484_v14  ;;  %vm1618_vm9 = vweird.f32 %v2588_v34 }
 0x254   : > { %2591 = vrcp.f32 %v1485_v53  ;;  %v1610_v41 = vsel %vm1607_vm8, %v1609_v61, %v1605_v49  ;;  %vm1619_vm11 = vmor %vm1617_vm10, %vm1618_vm9  ;;  %v1638_v63 = vand.u32 2147483648, %v1485_v53  ;;  %v1636_v9 = vand.u32 2147483647, %v1485_v53 }
 0x255   : > { %2379 = vmatmul.msk.f32.gmra.mxu0 %vm1310_vm5, %v1610_v41  ;;  %v1614_v27 = vsub.f32 1.0, %v1613_v50  ;;  %vm1632_vm14 = vweird.f32 %v1485_v53 }
 0x256   : > { %v1413_v55 = vpop.f32.mrf.mxu3  ;;  %v1639_v15 = vor.u32 1.1754944e-38, %v1638_v63  ;;  %vm1637_vm0 = vcmp.eq.f32.partialorder %v1636_v9, 8.507059e+37 }
 0x257   : > { %v1414_v28 = vadd.f32 %v3469_v46, %v1413_v55  ;;  %v1615_v33 = vmul.f32 %v2588_v34, %v1614_v27 }
 0x259   : > { %v2590_v24 = vpop.eup %2589  ;;  %v2366_v56 = vmul.f32 -1.442695, %v1414_v28  ;;  %v1616_v31 = vadd.f32 %v2588_v34, %v1615_v33 }
 0x25a   : > { %v2592_v39 = vpop.eup %2591  ;;  %v1486_v57 = vadd.f32 1.0, %v2590_v24 }
 0x25b   : > { %2593 = vpow2.f32 %v2366_v56  ;;  %v1620_v2 = vsel %vm1619_vm11, %v2588_v34, %v1616_v31  ;;  %v1628_v6 = vmul.f32 %v2592_v39, %v1485_v53  ;;  %vm1633_vm13 = vweird.f32 %v2592_v39 }
 0x25c   : > { %2595 = vrcp.f32 %v1486_v57  ;;  %v1625_v25 = vsel %vm1622_vm12, %v1624_v18, %v1620_v2  ;;  %vm1634_vm15 = vmor %vm1632_vm14, %vm1633_vm13  ;;  %v1653_v62 = vand.u32 2147483648, %v1486_v57  ;;  %v1651_v13 = vand.u32 2147483647, %v1486_v57 }
 0x25d   : > { %2380 = vmatmul.msk.f32.gmra.mxu0 %vm1310_vm5, %v1625_v25  ;;  %v1629_v21 = vsub.f32 1.0, %v1628_v6  ;;  %vm1647_vm2 = vweird.f32 %v1486_v57 }
 0x25e   : > { %v1416_v51 = vpop.f32.mrf.mxu3  ;;  %v1654_v26 = vor.u32 1.1754944e-38, %v1653_v62  ;;  %vm1652_vm4 = vcmp.eq.f32.partialorder %v1651_v13, 8.507059e+37 }
 0x25f   : > { %v1417_v7 = vadd.f32 %v3469_v46, %v1416_v51  ;;  %v1630_v11 = vmul.f32 %v2592_v39, %v1629_v21 }
 0x261   : > { %v2594_v43 = vpop.eup %2593  ;;  %v2367_v5 = vmul.f32 -1.442695, %v1417_v7  ;;  %v1631_v10 = vadd.f32 %v2592_v39, %v1630_v11 }
 0x262   : > { %v2596_v42 = vpop.eup %2595  ;;  %v1487_v52 = vadd.f32 1.0, %v2594_v43 }
 0x263   : > { %2597 = vpow2.f32 %v2367_v5  ;;  %v1635_v30 = vsel %vm1634_vm15, %v2592_v39, %v1631_v10  ;;  %v1643_v3 = vmul.f32 %v2596_v42, %v1486_v57  ;;  %vm1648_vm1 = vweird.f32 %v2596_v42 }
 0x264   : > { %2599 = vrcp.f32 %v1487_v52  ;;  %v1640_v47 = vsel %vm1637_vm0, %v1639_v15, %v1635_v30  ;;  %vm1649_vm3 = vmor %vm1647_vm2, %vm1648_vm1  ;;  %v1668_v38 = vand.u32 2147483648, %v1487_v52  ;;  %v1666_v4 = vand.u32 2147483647, %v1487_v52 }
 0x265   : > { %2381 = vmatmul.msk.f32.gmra.mxu0 %vm1310_vm5, %v1640_v47  ;;  %v1644_v45 = vsub.f32 1.0, %v1643_v3  ;;  %vm1662_vm7 = vweird.f32 %v1487_v52 }
 0x266   : > { %v1419_v58 = vpop.f32.mrf.mxu3  ;;  %v1669_v48 = vor.u32 1.1754944e-38, %v1668_v38  ;;  %vm1667_vm9 = vcmp.eq.f32.partialorder %v1666_v4, 8.507059e+37 }
 0x267   : > { %v1420_v8 = vadd.f32 %v3469_v46, %v1419_v58  ;;  %v1645_v20 = vmul.f32 %v2596_v42, %v1644_v45 }
 0x269   : > { %v2598_v23 = vpop.eup %2597  ;;  %v2368_v29 = vmul.f32 -1.442695, %v1420_v8  ;;  %v1646_v22 = vadd.f32 %v2596_v42, %v1645_v20 }
 0x26a   : > { %v2600_v59 = vpop.eup %2599  ;;  %v1488_v0 = vadd.f32 1.0, %v2598_v23 }
 0x26b   : > { %2601 = vpow2.f32 %v2368_v29  ;;  %v1650_v32 = vsel %vm1649_vm3, %v2596_v42, %v1646_v22  ;;  %v1658_v14 = vmul.f32 %v2600_v59, %v1487_v52  ;;  %vm1663_vm6 = vweird.f32 %v2600_v59 }
 0x26c   : > { %2603 = vrcp.f32 %v1488_v0  ;;  %v1655_v19 = vsel %vm1652_vm4, %v1654_v26, %v1650_v32  ;;  %vm1664_vm8 = vmor %vm1662_vm7, %vm1663_vm6  ;;  %v1683_v41 = vand.u32 2147483648, %v1488_v0  ;;  %v1681_v54 = vand.u32 2147483647, %v1488_v0  ;;  %v2486_v26 = vld [vmem:[%s3675_s6] ss:$0 sm:$0xff] }
 0x26d   : > { %2382 = vmatmul.msk.f32.gmra.mxu0 %vm1310_vm5, %v1655_v19  ;;  %v1659_v36 = vsub.f32 1.0, %v1658_v14  ;;  %vm1677_vm11 = vweird.f32 %v1488_v0 }
 0x26e   : > { %v1422_v35 = vpop.f32.mrf.mxu3  ;;  %v1684_v31 = vor.u32 1.1754944e-38, %v1683_v41  ;;  %vm1682_vm13 = vcmp.eq.f32.partialorder %v1681_v54, 8.507059e+37 }
 0x26f   : > { %v1423_v17 = vadd.f32 %v3469_v46, %v1422_v35  ;;  %v1660_v1 = vmul.f32 %v2600_v59, %v1659_v36 }
 0x271   : > { %v2602_v16 = vpop.eup %2601  ;;  %v2369_v40 = vmul.f32 -1.442695, %v1423_v17  ;;  %v1661_v44 = vadd.f32 %v2600_v59, %v1660_v1 }
 0x272   : > { %v2604_v60 = vpop.eup %2603  ;;  %v1489_v12 = vadd.f32 1.0, %v2602_v16 }
 0x273   : > { %2605 = vpow2.f32 %v2369_v40  ;;  %v1665_v34 = vsel %vm1664_vm8, %v2600_v59, %v1661_v44  ;;  %v1673_v53 = vmul.f32 %v2604_v60, %v1488_v0  ;;  %vm1678_vm10 = vweird.f32 %v2604_v60 }
 0x274   : > { %2607 = vrcp.f32 %v1489_v12  ;;  %v1670_v61 = vsel %vm1667_vm9, %v1669_v48, %v1665_v34  ;;  %vm1679_vm12 = vmor %vm1677_vm11, %vm1678_vm10  ;;  %v1698_v2 = vand.u32 2147483648, %v1489_v12  ;;  %v1696_v25 = vand.u32 2147483647, %v1489_v12 }
 0x275   : > { %2383 = vmatmul.msk.f32.gmra.mxu0 %vm1310_vm5, %v1670_v61  ;;  %v1674_v49 = vsub.f32 1.0, %v1673_v53  ;;  %vm1692_vm15 = vweird.f32 %v1489_v12 }
 0x276   : > { %v1425_v50 = vpop.f32.mrf.mxu3  ;;  %v1699_v11 = vor.u32 1.1754944e-38, %v1698_v2  ;;  %vm1697_vm1 = vcmp.eq.f32.partialorder %v1696_v25, 8.507059e+37 }
 0x277   : > { %v1426_v27 = vadd.f32 %v3469_v46, %v1425_v50  ;;  %v1675_v55 = vmul.f32 %v2604_v60, %v1674_v49 }
 0x279   : > { %v2606_v28 = vpop.eup %2605  ;;  %v2370_v33 = vmul.f32 -1.442695, %v1426_v27  ;;  %v1676_v37 = vadd.f32 %v2604_v60, %v1675_v55 }
 0x27a   : > { %v2608_v24 = vpop.eup %2607  ;;  %v1490_v56 = vadd.f32 1.0, %v2606_v28 }
 0x27b   : > { %2609 = vpow2.f32 %v2370_v33  ;;  %v1680_v39 = vsel %vm1679_vm12, %v2604_v60, %v1676_v37  ;;  %v1688_v57 = vmul.f32 %v2608_v24, %v1489_v12  ;;  %vm1693_vm14 = vweird.f32 %v2608_v24 }
 0x27c   : > { %2611 = vrcp.f32 %v1490_v56  ;;  %v1685_v18 = vsel %vm1682_vm13, %v1684_v31, %v1680_v39  ;;  %vm1694_vm0 = vmor %vm1692_vm15, %vm1693_vm14  ;;  %v1713_v42 = vand.u32 2147483648, %v1490_v56  ;;  %v1711_v15 = vand.u32 2147483647, %v1490_v56 }
 0x27d   : > { %2384 = vmatmul.msk.f32.gmra.mxu0 %vm1310_vm5, %v1685_v18  ;;  %v1689_v46 = vsub.f32 1.0, %v1688_v57  ;;  %vm1707_vm3 = vweird.f32 %v1490_v56 }
 0x27e   : > { %v1714_v47 = vor.u32 1.1754944e-38, %v1713_v42  ;;  %vm1712_vm6 = vcmp.eq.f32.partialorder %v1711_v15, 8.507059e+37 }
 0x27f   : > { %v1690_v6 = vmul.f32 %v2608_v24, %v1689_v46 }
 0x281   : > { %v2610_v21 = vpop.eup %2609  ;;  %v1691_v51 = vadd.f32 %v2608_v24, %v1690_v6 }
 0x282   : > { %v2612_v63 = vpop.eup %2611  ;;  %v1491_v7 = vadd.f32 1.0, %v2610_v21 }
 0x283   : > { %v1695_v9 = vsel %vm1694_vm0, %v2608_v24, %v1691_v51  ;;  %v1703_v43 = vmul.f32 %v2612_v63, %v1490_v56  ;;  %vm1708_vm2 = vweird.f32 %v2612_v63 }
 0x284   : > { %2613 = vrcp.f32 %v1491_v7  ;;  %v1700_v5 = vsel %vm1697_vm1, %v1699_v11, %v1695_v9  ;;  %vm1709_vm4 = vmor %vm1707_vm3, %vm1708_vm2  ;;  %v1728_v20 = vand.u32 2147483648, %v1491_v7  ;;  %v1726_v23 = vand.u32 2147483647, %v1491_v7 }
 0x285   : > { %2385 = vmatmul.msk.f32.gmra.mxu0 %vm1310_vm5, %v1700_v5  ;;  %v1704_v10 = vsub.f32 1.0, %v1703_v43  ;;  %vm1722_vm8 = vweird.f32 %v1491_v7 }
 0x286   : > { %v1729_v22 = vor.u32 1.1754944e-38, %v1728_v20  ;;  %vm1727_vm10 = vcmp.eq.f32.partialorder %v1726_v23, 8.507059e+37 }
 0x287   : > { %v1705_v52 = vmul.f32 %v2612_v63, %v1704_v10 }
 0x289   : > { %v1706_v30 = vadd.f32 %v2612_v63, %v1705_v52 }
 0x28a   : > { %v2614_v3 = vpop.eup %2613 }
 0x28b   : > { %v1710_v45 = vsel %vm1709_vm4, %v2612_v63, %v1706_v30  ;;  %v1718_v58 = vmul.f32 %v2614_v3, %v1491_v7  ;;  %vm1723_vm7 = vweird.f32 %v2614_v3 }
 0x28c   : > { %v1715_v62 = vsel %vm1712_vm6, %v1714_v47, %v1710_v45  ;;  %vm1724_vm9 = vmor %vm1722_vm8, %vm1723_vm7 }
 0x28d   : > { %2386 = vmatmul.msk.f32.gmra.mxu0 %vm1310_vm5, %v1715_v62  ;;  %v1719_v8 = vsub.f32 1.0, %v1718_v58 }
 0x28f   : > { %v1720_v13 = vmul.f32 %v2614_v3, %v1719_v8 }
 0x291   : > { %v1721_v29 = vadd.f32 %v2614_v3, %v1720_v13 }
 0x293   : > { %v1725_v59 = vsel %vm1724_vm9, %v2614_v3, %v1721_v29 }
 0x294   : > { %v1730_v0 = vsel %vm1727_vm10, %v1729_v22, %v1725_v59 }
 0x295   : > { %2387 = vmatmul.msk.f32.gmra.mxu0 %vm1310_vm5, %v1730_v0 }
 0x29a   : > { %v1805_v32 = vpop.f32.mrf.mxu0 }
 0x29b   : > { %v1806_v14 = vadd.f32 %v2486_v26, %v1805_v32 }
 0x29d   : > { %1853 = vmax.xlane.f32.xlu0 %v1806_v14 }
 0x2a2   : > { %v1808_v19 = vpop.f32.mrf.mxu0 }
 0x2a3   : > { %v1809_v36 = vadd.f32 %v2486_v26, %v1808_v19 }
 0x2a5   : > { %1855 = vmax.xlane.f32.xlu0 %v1809_v36 }
 0x2aa   : > { %v1811_v35 = vpop.f32.mrf.mxu0 }
 0x2ab   : > { %v1812_v38 = vadd.f32 %v2486_v26, %v1811_v35 }
 0x2ad   : > { %1857 = vmax.xlane.f32.xlu1 %v1812_v38 }
 0x2b2   : > { %v1814_v17 = vpop.f32.mrf.mxu0 }
 0x2b3   : > { %v1815_v1 = vadd.f32 %v2486_v26, %v1814_v17 }
 0x2b5   : > { %1859 = vmax.xlane.f32.xlu1 %v1815_v1 }
 0x2ba   : > { %v1817_v4 = vpop.f32.mrf.mxu0 }
 0x2bb   : > { %v1818_v16 = vadd.f32 %v2486_v26, %v1817_v4 }
 0x2bd   : > { %1861 = vmax.xlane.f32.xlu2 %v1818_v16 }
 0x2c2   : > { %v1820_v40 = vpop.f32.mrf.mxu0 }
 0x2c3   : > { %v3506_v44 = vadd.f32 %v2486_v26, %v1820_v40 }
 0x2c5   : > { %1863 = vmax.xlane.f32.xlu2 %v3506_v44 }
 0x2ca   : > { %v1823_v60 = vpop.f32.mrf.mxu0 }
 0x2cb   : > { %v3509_v12 = vadd.f32 %v2486_v26, %v1823_v60 }
 0x2cd   : > { %1865 = vmax.xlane.f32.xlu0 %v3509_v12 }
 0x2d2   : > { %v1826_v48 = vpop.f32.mrf.mxu0 }
 0x2d3   : > { %v3512_v34 = vadd.f32 %v2486_v26, %v1826_v48 }
 0x2d5   : > { %1867 = vmax.xlane.f32.xlu1 %v3512_v34 }
 0x2da   : > { %v1829_v53 = vpop.f32.mrf.mxu0 }
 0x2db   : > { %v3515_v61 = vadd.f32 %v2486_v26, %v1829_v53 }
 0x2dd   : > { %1869 = vmax.xlane.f32.xlu2 %v3515_v61 }
 0x2e2   : > { %v1832_v49 = vpop.f32.mrf.mxu0 }
 0x2e3   : > { %v3518_v50 = vadd.f32 %v2486_v26, %v1832_v49 }
 0x2e5   : > { %1871 = vmax.xlane.f32.xlu0 %v3518_v50 }
 0x2ea   : > { %v1835_v41 = vpop.f32.mrf.mxu0 }
 0x2eb   : > { %v3521_v27 = vadd.f32 %v2486_v26, %v1835_v41 }
 0x2ed   : > { %1873 = vmax.xlane.f32.xlu1 %v3521_v27 }
 0x2f2   : > { %v1838_v55 = vpop.f32.mrf.mxu0 }
 0x2f3   : > { %v3524_v54 = vadd.f32 %v2486_v26, %v1838_v55 }
 0x2f5   : > { %1875 = vmax.xlane.f32.xlu2 %v3524_v54 }
 0x2fa   : > { %v1841_v28 = vpop.f32.mrf.mxu0 }
 0x2fb   : > { %v3527_v33 = vadd.f32 %v2486_v26, %v1841_v28 }
 0x2fd   : > { %1877 = vmax.xlane.f32.xlu0 %v3527_v33 }
 0x302   : > { %v1844_v37 = vpop.f32.mrf.mxu0 }
 0x303   : > { %v3530_v24 = vadd.f32 %v2486_v26, %v1844_v37 }
 0x305   : > { %1879 = vmax.xlane.f32.xlu1 %v3530_v24 }
 0x30a   : > { %v1847_v56 = vpop.f32.mrf.mxu0 }
 0x30b   : > { %v3533_v31 = vadd.f32 %v2486_v26, %v1847_v56 }
 0x30d   : > { %1881 = vmax.xlane.f32.xlu2 %v3533_v31 }
 0x310   : > { %v1854_v39 = vpop.xlane.xlu0 %1853 }
 0x311   : > { %v1885_v57 = vsub.f32 %v1806_v14, %v1854_v39 }
 0x312   : > { %v1850_v18 = vpop.f32.mrf.mxu0 }
 0x313   : > { %v1901_v46 = vmul.f32 1.442695, %v1885_v57  ;;  %v3536_v2 = vadd.f32 %v2486_v26, %v1850_v18 }
 0x315   : > { %2615 = vpow2.f32 %v1901_v46  ;;  %1883 = vmax.xlane.f32.xlu0 %v3536_v2 }
 0x318   : > { %v1856_v6 = vpop.xlane.xlu0 %1855 }
 0x319   : > { %v1886_v25 = vsub.f32 %v1809_v36, %v1856_v6 }
 0x31b   : > { %v3539_v21 = vpop.eup %2615  ;;  %v1903_v51 = vmul.f32 1.442695, %v1886_v25 }
 0x31c   : > { %1933 = vadd.xlane.f32.xlu1 %v3539_v21 }
 0x31d   : > { %2617 = vpow2.f32 %v1903_v51 }
 0x320   : > { %v1858_v63 = vpop.xlane.xlu1 %1857 }
 0x321   : > { %v1887_v7 = vsub.f32 %v1812_v38, %v1858_v63 }
 0x323   : > { %v3542_v11 = vpop.eup %2617  ;;  %v1905_v9 = vmul.f32 1.442695, %v1887_v7 }
 0x324   : > { %1935 = vadd.xlane.f32.xlu2 %v3542_v11 }
 0x325   : > { %2619 = vpow2.f32 %v1905_v9 }
 0x328   : > { %v1860_v43 = vpop.xlane.xlu1 %1859 }
 0x329   : > { %v1888_v5 = vsub.f32 %v1815_v1, %v1860_v43 }
 0x32b   : > { %v3545_v10 = vpop.eup %2619  ;;  %v1907_v42 = vmul.f32 1.442695, %v1888_v5 }
 0x32c   : > { %1937 = vadd.xlane.f32.xlu0 %v3545_v10 }
 0x32d   : > { %2621 = vpow2.f32 %v1907_v42 }
 0x330   : > { %v1862_v52 = vpop.xlane.xlu2 %1861 }
 0x331   : > { %v1889_v15 = vsub.f32 %v1818_v16, %v1862_v52 }
 0x333   : > { %v3548_v30 = vpop.eup %2621  ;;  %v1909_v3 = vmul.f32 1.442695, %v1889_v15 }
 0x334   : > { %1939 = vadd.xlane.f32.xlu1 %v3548_v30 }
 0x335   : > { %2623 = vpow2.f32 %v1909_v3 }
 0x338   : > { %v1864_v47 = vpop.xlane.xlu2 %1863 }
 0x339   : > { %v1890_v45 = vsub.f32 %v3506_v44, %v1864_v47 }
 0x33b   : > { %v3552_v58 = vpop.eup %2623  ;;  %v1911_v62 = vmul.f32 1.442695, %v1890_v45 }
 0x33c   : > { %1941 = vadd.xlane.f32.xlu2 %v3552_v58 }
 0x33d   : > { %2625 = vpow2.f32 %v1911_v62 }
 0x340   : > { %v1866_v8 = vpop.xlane.xlu0 %1865 }
 0x341   : > { %v1891_v20 = vsub.f32 %v3509_v12, %v1866_v8 }
 0x343   : > { %v3556_v13 = vpop.eup %2625  ;;  %v1913_v23 = vmul.f32 1.442695, %v1891_v20 }
 0x344   : > { %1943 = vadd.xlane.f32.xlu0 %v3556_v13 }
 0x345   : > { %2627 = vpow2.f32 %v1913_v23 }
 0x348   : > { %v1868_v29 = vpop.xlane.xlu1 %1867 }
 0x349   : > { %v1892_v22 = vsub.f32 %v3512_v34, %v1868_v29 }
 0x34b   : > { %v3560_v59 = vpop.eup %2627  ;;  %v1915_v0 = vmul.f32 1.442695, %v1892_v22 }
 0x34c   : > { %1945 = vadd.xlane.f32.xlu1 %v3560_v59 }
 0x34d   : > { %2629 = vpow2.f32 %v1915_v0 }
 0x350   : > { %v1870_v26 = vpop.xlane.xlu2 %1869 }
 0x351   : > { %v1893_v32 = vsub.f32 %v3515_v61, %v1870_v26 }
 0x353   : > { %v3564_v14 = vpop.eup %2629  ;;  %v1917_v19 = vmul.f32 1.442695, %v1893_v32 }
 0x354   : > { %1947 = vadd.xlane.f32.xlu2 %v3564_v14 }
 0x355   : > { %2631 = vpow2.f32 %v1917_v19 }
 0x358   : > { %v1872_v36 = vpop.xlane.xlu0 %1871 }
 0x359   : > { %v1894_v35 = vsub.f32 %v3518_v50, %v1872_v36 }
 0x35b   : > { %v3568_v38 = vpop.eup %2631  ;;  %v1919_v17 = vmul.f32 1.442695, %v1894_v35 }
 0x35c   : > { %1949 = vadd.xlane.f32.xlu0 %v3568_v38 }
 0x35d   : > { %2633 = vpow2.f32 %v1919_v17 }
 0x360   : > { %v1874_v1 = vpop.xlane.xlu1 %1873 }
 0x361   : > { %v1895_v4 = vsub.f32 %v3521_v27, %v1874_v1 }
 0x363   : > { %v3572_v16 = vpop.eup %2633  ;;  %v1921_v40 = vmul.f32 1.442695, %v1895_v4 }
 0x364   : > { %1951 = vadd.xlane.f32.xlu1 %v3572_v16 }
 0x365   : > { %2635 = vpow2.f32 %v1921_v40 }
 0x368   : > { %v1876_v44 = vpop.xlane.xlu2 %1875 }
 0x369   : > { %v1896_v60 = vsub.f32 %v3524_v54, %v1876_v44 }
 0x36b   : > { %v3576_v12 = vpop.eup %2635  ;;  %v1923_v48 = vmul.f32 1.442695, %v1896_v60 }
 0x36c   : > { %1953 = vadd.xlane.f32.xlu2 %v3576_v12 }
 0x36d   : > { %2637 = vpow2.f32 %v1923_v48 }
 0x370   : > { %v1878_v34 = vpop.xlane.xlu0 %1877 }
 0x371   : > { %v1897_v53 = vsub.f32 %v3527_v33, %v1878_v34 }
 0x373   : > { %v3580_v61 = vpop.eup %2637  ;;  %v1925_v49 = vmul.f32 1.442695, %v1897_v53 }
 0x374   : > { %1955 = vadd.xlane.f32.xlu0 %v3580_v61 }
 0x375   : > { %2639 = vpow2.f32 %v1925_v49 }
 0x378   : > { %v1880_v50 = vpop.xlane.xlu1 %1879 }
 0x379   : > { %v1898_v41 = vsub.f32 %v3530_v24, %v1880_v50 }
 0x37b   : > { %v3584_v27 = vpop.eup %2639  ;;  %v1927_v55 = vmul.f32 1.442695, %v1898_v41 }
 0x37c   : > { %1957 = vadd.xlane.f32.xlu1 %v3584_v27 }
 0x37d   : > { %2641 = vpow2.f32 %v1927_v55 }
 0x380   : > { %v1882_v54 = vpop.xlane.xlu2 %1881 }
 0x381   : > { %v1899_v28 = vsub.f32 %v3533_v31, %v1882_v54 }
 0x383   : > { %v3588_v37 = vpop.eup %2641  ;;  %v1929_v33 = vmul.f32 1.442695, %v1899_v28 }
 0x384   : > { %1959 = vadd.xlane.f32.xlu2 %v3588_v37 }
 0x385   : > { %2643 = vpow2.f32 %v1929_v33 }
 0x388   : > { %v1884_v56 = vpop.xlane.xlu0 %1883 }
 0x389   : > { %v1900_v39 = vsub.f32 %v3536_v2, %v1884_v56 }
 0x38b   : > { %v3592_v24 = vpop.eup %2643  ;;  %v1931_v57 = vmul.f32 1.442695, %v1900_v39 }
 0x38c   : > { %1961 = vadd.xlane.f32.xlu0 %v3592_v24 }
 0x38d   : > { %2645 = vpow2.f32 %v1931_v57 }
 0x38f   : > { %v1934_v18 = vpop.xlane.xlu1 %1933 }
 0x390   : > { %2647 = vrcp.f32 %v1934_v18  ;;  %v1976_v2 = vand.u32 2147483648, %v1934_v18  ;;  %v1974_v7 = vand.u32 2147483647, %v1934_v18  ;;  %vm1970_vm11 = vweird.f32 %v1934_v18 }
 0x392   : > { %v1977_v5 = vor.u32 1.1754944e-38, %v1976_v2  ;;  %vm1975_vm13 = vcmp.eq.f32.partialorder %v1974_v7, 8.507059e+37 }
 0x393   : > { %v3595_v31 = vpop.eup %2645 }
 0x394   : > { %1963 = vadd.xlane.f32.xlu1 %v3595_v31 }
 0x396   : > { %v2648_v46 = vpop.eup %2647 }
 0x397   : > { %v1966_v6 = vmul.f32 %v2648_v46, %v1934_v18  ;;  %v1936_v25 = vpop.xlane.xlu2 %1935  ;;  %vm1971_vm5 = vweird.f32 %v2648_v46 }
 0x398   : > { %2649 = vrcp.f32 %v1936_v25  ;;  %vm1972_vm12 = vmor %vm1970_vm11, %vm1971_vm5  ;;  %v1991_v62 = vand.u32 2147483648, %v1936_v25  ;;  %v1989_v20 = vand.u32 2147483647, %v1936_v25  ;;  %vm1985_vm15 = vweird.f32 %v1936_v25 }
 0x399   : > { %v1967_v51 = vsub.f32 1.0, %v1966_v6 }
 0x39a   : > { %v1992_v22 = vor.u32 1.1754944e-38, %v1991_v62  ;;  %vm1990_vm1 = vcmp.eq.f32.partialorder %v1989_v20, 8.507059e+37 }
 0x39b   : > { %v1968_v63 = vmul.f32 %v2648_v46, %v1967_v51 }
 0x39d   : > { %v1969_v9 = vadd.f32 %v2648_v46, %v1968_v63 }
 0x39e   : > { %v2650_v43 = vpop.eup %2649 }
 0x39f   : > { %v1973_v42 = vsel %vm1972_vm12, %v2648_v46, %v1969_v9  ;;  %v1981_v52 = vmul.f32 %v2650_v43, %v1936_v25  ;;  %v1938_v15 = vpop.xlane.xlu0 %1937  ;;  %vm1986_vm14 = vweird.f32 %v2650_v43 }
 0x3a0   : > { %v1978_v3 = vsel %vm1975_vm13, %v1977_v5, %v1973_v42  ;;  %2651 = vrcp.f32 %v1938_v15  ;;  %vm1987_vm0 = vmor %vm1985_vm15, %vm1986_vm14  ;;  %v2006_v35 = vand.u32 2147483648, %v1938_v15  ;;  %v2004_v1 = vand.u32 2147483647, %v1938_v15 }
 0x3a1   : > { %v1979_v47 = vmul.f32 %v3539_v21, %v1978_v3  ;;  %v1982_v45 = vsub.f32 1.0, %v1981_v52  ;;  %vm2000_vm3 = vweird.f32 %v1938_v15 }
 0x3a2   : > { %v2007_v44 = vor.u32 1.1754944e-38, %v2006_v35  ;;  %vm2005_vm6 = vcmp.eq.f32.partialorder %v2004_v1, 8.507059e+37 }
 0x3a3   : > { %2205 = vst [vmem:[%s3602_s15] sm:$0xff] %v1979_v47  ;;  %v1983_v8 = vmul.f32 %v2650_v43, %v1982_v45 }
 0x3a5   : > { %v1984_v23 = vadd.f32 %v2650_v43, %v1983_v8 }
 0x3a6   : > { %v2652_v29 = vpop.eup %2651 }
 0x3a7   : > { %v1988_v0 = vsel %vm1987_vm0, %v2650_v43, %v1984_v23  ;;  %v1996_v26 = vmul.f32 %v2652_v29, %v1938_v15  ;;  %v1940_v32 = vpop.xlane.xlu1 %1939  ;;  %vm2001_vm2 = vweird.f32 %v2652_v29 }
 0x3a8   : > { %v1993_v21 = vsel %vm1990_vm1, %v1992_v22, %v1988_v0  ;;  %2653 = vrcp.f32 %v1940_v32  ;;  %vm2002_vm4 = vmor %vm2000_vm3, %vm2001_vm2  ;;  %v2021_v50 = vand.u32 2147483648, %v1940_v32  ;;  %v2019_v55 = vand.u32 2147483647, %v1940_v32 }
 0x3a9   : > { %v1994_v19 = vmul.f32 %v3542_v11, %v1993_v21  ;;  %v1997_v36 = vsub.f32 1.0, %v1996_v26  ;;  %vm2015_vm8 = vweird.f32 %v1940_v32 }
 0x3aa   : > { %v2022_v33 = vor.u32 1.1754944e-38, %v2021_v50  ;;  %vm2020_vm10 = vcmp.eq.f32.partialorder %v2019_v55, 8.507059e+37 }
 0x3ab   : > { %2206 = vst [vmem:[%s3602_s15 + $0x8] sm:$0xff] %v1994_v19  ;;  %v1998_v17 = vmul.f32 %v2652_v29, %v1997_v36 }
 0x3ad   : > { %v1999_v4 = vadd.f32 %v2652_v29, %v1998_v17 }
 0x3ae   : > { %v2654_v40 = vpop.eup %2653 }
 0x3af   : > { %v2003_v60 = vsel %vm2002_vm4, %v2652_v29, %v1999_v4  ;;  %v2011_v48 = vmul.f32 %v2654_v40, %v1940_v32  ;;  %v1942_v34 = vpop.xlane.xlu2 %1941  ;;  %vm2016_vm7 = vweird.f32 %v2654_v40 }
 0x3b0   : > { %v2008_v53 = vsel %vm2005_vm6, %v2007_v44, %v2003_v60  ;;  %2655 = vrcp.f32 %v1942_v34  ;;  %vm2017_vm9 = vmor %vm2015_vm8, %vm2016_vm7  ;;  %v2036_v6 = vand.u32 2147483648, %v1942_v34  ;;  %v2034_v51 = vand.u32 2147483647, %v1942_v34 }
 0x3b1   : > { %v2009_v11 = vmul.f32 %v3545_v10, %v2008_v53  ;;  %v2012_v49 = vsub.f32 1.0, %v2011_v48  ;;  %vm2030_vm11 = vweird.f32 %v1942_v34 }
 0x3b2   : > { %v2037_v7 = vor.u32 1.1754944e-38, %v2036_v6  ;;  %vm2035_vm13 = vcmp.eq.f32.partialorder %v2034_v51, 8.507059e+37 }
 0x3b3   : > { %2207 = vst [vmem:[%s3602_s15 + $0x10] sm:$0xff] %v2009_v11  ;;  %v2013_v41 = vmul.f32 %v2654_v40, %v2012_v49 }
 0x3b5   : > { %v2014_v54 = vadd.f32 %v2654_v40, %v2013_v41 }
 0x3b6   : > { %v2656_v28 = vpop.eup %2655 }
 0x3b7   : > { %v2018_v56 = vsel %vm2017_vm9, %v2654_v40, %v2014_v54  ;;  %v2026_v39 = vmul.f32 %v2656_v28, %v1942_v34  ;;  %v1944_v57 = vpop.xlane.xlu0 %1943  ;;  %vm2031_vm5 = vweird.f32 %v2656_v28 }
 0x3b8   : > { %v2023_v18 = vsel %vm2020_vm10, %v2022_v33, %v2018_v56  ;;  %2657 = vrcp.f32 %v1944_v57  ;;  %vm2032_vm12 = vmor %vm2030_vm11, %vm2031_vm5  ;;  %v2051_v15 = vand.u32 2147483648, %v1944_v57  ;;  %v2049_v47 = vand.u32 2147483647, %v1944_v57 }
 0x3b9   : > { %v2024_v10 = vmul.f32 %v3548_v30, %v2023_v18  ;;  %v2027_v46 = vsub.f32 1.0, %v2026_v39  ;;  %vm2045_vm15 = vweird.f32 %v1944_v57 }
 0x3ba   : > { %v2052_v8 = vor.u32 1.1754944e-38, %v2051_v15  ;;  %vm2050_vm1 = vcmp.eq.f32.partialorder %v2049_v47, 8.507059e+37 }
 0x3bb   : > { %2208 = vst [vmem:[%s3602_s15 + $0x18] sm:$0xff] %v2024_v10  ;;  %v2028_v25 = vmul.f32 %v2656_v28, %v2027_v46 }
 0x3bd   : > { %v2029_v2 = vadd.f32 %v2656_v28, %v2028_v25 }
 0x3be   : > { %v2658_v63 = vpop.eup %2657 }
 0x3bf   : > { %v2033_v9 = vsel %vm2032_vm12, %v2656_v28, %v2029_v2  ;;  %v2041_v43 = vmul.f32 %v2658_v63, %v1944_v57  ;;  %v1946_v5 = vpop.xlane.xlu1 %1945  ;;  %vm2046_vm14 = vweird.f32 %v2658_v63 }
 0x3c0   : > { %v2038_v42 = vsel %vm2035_vm13, %v2037_v7, %v2033_v9  ;;  %2659 = vrcp.f32 %v1946_v5  ;;  %vm2047_vm0 = vmor %vm2045_vm15, %vm2046_vm14  ;;  %v2066_v26 = vand.u32 2147483648, %v1946_v5  ;;  %v2064_v21 = vand.u32 2147483647, %v1946_v5 }
 0x3c1   : > { %v2039_v30 = vmul.f32 %v3552_v58, %v2038_v42  ;;  %v2042_v52 = vsub.f32 1.0, %v2041_v43  ;;  %vm2060_vm3 = vweird.f32 %v1946_v5 }
 0x3c2   : > { %v2067_v35 = vor.u32 1.1754944e-38, %v2066_v26  ;;  %vm2065_vm6 = vcmp.eq.f32.partialorder %v2064_v21, 8.507059e+37 }
 0x3c3   : > { %2209 = vst [vmem:[%s3602_s15 + $0x20] sm:$0xff] %v2039_v30  ;;  %v2043_v3 = vmul.f32 %v2658_v63, %v2042_v52 }
 0x3c5   : > { %v2044_v45 = vadd.f32 %v2658_v63, %v2043_v3 }
 0x3c6   : > { %v2660_v62 = vpop.eup %2659 }
 0x3c7   : > { %v2048_v20 = vsel %vm2047_vm0, %v2658_v63, %v2044_v45  ;;  %v2056_v23 = vmul.f32 %v2660_v62, %v1946_v5  ;;  %v1948_v29 = vpop.xlane.xlu2 %1947  ;;  %vm2061_vm2 = vweird.f32 %v2660_v62 }
 0x3c8   : > { %v2053_v22 = vsel %vm2050_vm1, %v2052_v8, %v2048_v20  ;;  %2661 = vrcp.f32 %v1948_v29  ;;  %vm2062_vm4 = vmor %vm2060_vm3, %vm2061_vm2  ;;  %v2081_v60 = vand.u32 2147483648, %v1948_v29  ;;  %v2079_v34 = vand.u32 2147483647, %v1948_v29 }
 0x3c9   : > { %v2054_v58 = vmul.f32 %v3556_v13, %v2053_v22  ;;  %v2057_v0 = vsub.f32 1.0, %v2056_v23  ;;  %vm2075_vm8 = vweird.f32 %v1948_v29 }
 0x3ca   : > { %v2082_v49 = vor.u32 1.1754944e-38, %v2081_v60  ;;  %vm2080_vm10 = vcmp.eq.f32.partialorder %v2079_v34, 8.507059e+37 }
 0x3cb   : > { %2210 = vst [vmem:[%s3602_s15 + $0x28] sm:$0xff] %v2054_v58  ;;  %v2058_v32 = vmul.f32 %v2660_v62, %v2057_v0 }
 0x3cd   : > { %v2059_v19 = vadd.f32 %v2660_v62, %v2058_v32 }
 0x3ce   : > { %v2662_v36 = vpop.eup %2661 }
 0x3cf   : > { %v2063_v17 = vsel %vm2062_vm4, %v2660_v62, %v2059_v19  ;;  %v2071_v1 = vmul.f32 %v2662_v36, %v1948_v29  ;;  %v1950_v4 = vpop.xlane.xlu0 %1949  ;;  %vm2076_vm7 = vweird.f32 %v2662_v36 }
 0x3d0   : > { %v2068_v40 = vsel %vm2065_vm6, %v2067_v35, %v2063_v17  ;;  %2663 = vrcp.f32 %v1950_v4  ;;  %vm2077_vm9 = vmor %vm2075_vm8, %vm2076_vm7  ;;  %v2096_v33 = vand.u32 2147483648, %v1950_v4  ;;  %v2094_v39 = vand.u32 2147483647, %v1950_v4 }
 0x3d1   : > { %v2069_v13 = vmul.f32 %v3560_v59, %v2068_v40  ;;  %v2072_v44 = vsub.f32 1.0, %v2071_v1  ;;  %vm2090_vm11 = vweird.f32 %v1950_v4 }
 0x3d2   : > { %v2097_v10 = vor.u32 1.1754944e-38, %v2096_v33  ;;  %vm2095_vm13 = vcmp.eq.f32.partialorder %v2094_v39, 8.507059e+37 }
 0x3d3   : > { %2211 = vst [vmem:[%s3602_s15 + $0x30] sm:$0xff] %v2069_v13  ;;  %v2073_v48 = vmul.f32 %v2662_v36, %v2072_v44 }
 0x3d5   : > { %v2074_v53 = vadd.f32 %v2662_v36, %v2073_v48 }
 0x3d6   : > { %v2664_v11 = vpop.eup %2663 }
 0x3d7   : > { %v2078_v50 = vsel %vm2077_vm9, %v2662_v36, %v2074_v53  ;;  %v2086_v41 = vmul.f32 %v2664_v11, %v1950_v4  ;;  %v1952_v55 = vpop.xlane.xlu1 %1951  ;;  %vm2091_vm5 = vweird.f32 %v2664_v11 }
 0x3d8   : > { %v2083_v54 = vsel %vm2080_vm10, %v2082_v49, %v2078_v50  ;;  %2665 = vrcp.f32 %v1952_v55  ;;  %vm2092_vm12 = vmor %vm2090_vm11, %vm2091_vm5  ;;  %v2111_v63 = vand.u32 2147483648, %v1952_v55  ;;  %v2109_v9 = vand.u32 2147483647, %v1952_v55 }
 0x3d9   : > { %v2084_v59 = vmul.f32 %v3564_v14, %v2083_v54  ;;  %v2087_v28 = vsub.f32 1.0, %v2086_v41  ;;  %vm2105_vm15 = vweird.f32 %v1952_v55 }
 0x3da   : > { %v2112_v42 = vor.u32 1.1754944e-38, %v2111_v63  ;;  %vm2110_vm1 = vcmp.eq.f32.partialorder %v2109_v9, 8.507059e+37 }
 0x3db   : > { %2212 = vst [vmem:[%s3602_s15 + $0x38] sm:$0xff] %v2084_v59  ;;  %v2088_v56 = vmul.f32 %v2664_v11, %v2087_v28 }
 0x3dd   : > { %v2089_v57 = vadd.f32 %v2664_v11, %v2088_v56 }
 0x3de   : > { %v2666_v18 = vpop.eup %2665 }
 0x3df   : > { %v2093_v46 = vsel %vm2092_vm12, %v2664_v11, %v2089_v57  ;;  %v2101_v6 = vmul.f32 %v2666_v18, %v1952_v55  ;;  %v1954_v25 = vpop.xlane.xlu2 %1953  ;;  %vm2106_vm14 = vweird.f32 %v2666_v18 }
 0x3e0   : > { %v2098_v51 = vsel %vm2095_vm13, %v2097_v10, %v2093_v46  ;;  %2667 = vrcp.f32 %v1954_v25  ;;  %vm2107_vm0 = vmor %vm2105_vm15, %vm2106_vm14  ;;  %v2126_v45 = vand.u32 2147483648, %v1954_v25  ;;  %v2124_v8 = vand.u32 2147483647, %v1954_v25 }
 0x3e1   : > { %v2099_v14 = vmul.f32 %v3568_v38, %v2098_v51  ;;  %v2102_v2 = vsub.f32 1.0, %v2101_v6  ;;  %vm2120_vm3 = vweird.f32 %v1954_v25 }
 0x3e2   : > { %v2127_v29 = vor.u32 1.1754944e-38, %v2126_v45  ;;  %vm2125_vm6 = vcmp.eq.f32.partialorder %v2124_v8, 8.507059e+37 }
 0x3e3   : > { %2213 = vst [vmem:[%s3602_s15 + $0x40] sm:$0xff] %v2099_v14  ;;  %v2103_v7 = vmul.f32 %v2666_v18, %v2102_v2 }
 0x3e5   : > { %v2104_v43 = vadd.f32 %v2666_v18, %v2103_v7 }
 0x3e6   : > { %v2668_v5 = vpop.eup %2667 }
 0x3e7   : > { %v2108_v30 = vsel %vm2107_vm0, %v2666_v18, %v2104_v43  ;;  %v2116_v52 = vmul.f32 %v2668_v5, %v1954_v25  ;;  %v1956_v15 = vpop.xlane.xlu0 %1955  ;;  %vm2121_vm2 = vweird.f32 %v2668_v5 }
 0x3e8   : > { %v2113_v3 = vsel %vm2110_vm1, %v2112_v42, %v2108_v30  ;;  %2669 = vrcp.f32 %v1956_v15  ;;  %vm2122_vm4 = vmor %vm2120_vm3, %vm2121_vm2  ;;  %v2141_v21 = vand.u32 2147483648, %v1956_v15  ;;  %v2139_v36 = vand.u32 2147483647, %v1956_v15 }
 0x3e9   : > { %v2114_v38 = vmul.f32 %v3572_v16, %v2113_v3  ;;  %v2117_v47 = vsub.f32 1.0, %v2116_v52  ;;  %vm2135_vm8 = vweird.f32 %v1956_v15 }
 0x3ea   : > { %v2142_v1 = vor.u32 1.1754944e-38, %v2141_v21  ;;  %vm2140_vm10 = vcmp.eq.f32.partialorder %v2139_v36, 8.507059e+37 }
 0x3eb   : > { %2214 = vst [vmem:[%s3602_s15 + $0x48] sm:$0xff] %v2114_v38  ;;  %v2118_v62 = vmul.f32 %v2668_v5, %v2117_v47 }
 0x3ed   : > { %v2119_v20 = vadd.f32 %v2668_v5, %v2118_v62 }
 0x3ee   : > { %v2670_v23 = vpop.eup %2669 }
 0x3ef   : > { %v2123_v22 = vsel %vm2122_vm4, %v2668_v5, %v2119_v20  ;;  %v2131_v58 = vmul.f32 %v2670_v23, %v1956_v15  ;;  %v1958_v0 = vpop.xlane.xlu1 %1957  ;;  %vm2136_vm7 = vweird.f32 %v2670_v23 }
 0x3f0   : > { %v2128_v26 = vsel %vm2125_vm6, %v2127_v29, %v2123_v22  ;;  %2671 = vrcp.f32 %v1958_v0  ;;  %vm2137_vm9 = vmor %vm2135_vm8, %vm2136_vm7  ;;  %v2156_v48 = vand.u32 2147483648, %v1958_v0  ;;  %v2154_v53 = vand.u32 2147483647, %v1958_v0 }
 0x3f1   : > { %v2129_v16 = vmul.f32 %v3576_v12, %v2128_v26  ;;  %v2132_v32 = vsub.f32 1.0, %v2131_v58  ;;  %vm2150_vm11 = vweird.f32 %v1958_v0 }
 0x3f2   : > { %v2157_v50 = vor.u32 1.1754944e-38, %v2156_v48  ;;  %vm2155_vm13 = vcmp.eq.f32.partialorder %v2154_v53, 8.507059e+37 }
 0x3f3   : > { %2215 = vst [vmem:[%s3602_s15 + $0x50] sm:$0xff] %v2129_v16  ;;  %v2133_v19 = vmul.f32 %v2670_v23, %v2132_v32 }
 0x3f5   : > { %v2134_v35 = vadd.f32 %v2670_v23, %v2133_v19 }
 0x3f6   : > { %v2672_v17 = vpop.eup %2671 }
 0x3f7   : > { %v2138_v4 = vsel %vm2137_vm9, %v2670_v23, %v2134_v35  ;;  %v2146_v40 = vmul.f32 %v2672_v17, %v1958_v0  ;;  %v1960_v13 = vpop.xlane.xlu2 %1959  ;;  %vm2151_vm5 = vweird.f32 %v2672_v17 }
 0x3f8   : > { %v2143_v44 = vsel %vm2140_vm10, %v2142_v1, %v2138_v4  ;;  %2673 = vrcp.f32 %v1960_v13  ;;  %vm2152_vm12 = vmor %vm2150_vm11, %vm2151_vm5  ;;  %v2171_v33 = vand.u32 2147483648, %v1960_v13  ;;  %v2169_v39 = vand.u32 2147483647, %v1960_v13 }
 0x3f9   : > { %v2144_v12 = vmul.f32 %v3580_v61, %v2143_v44  ;;  %v2147_v60 = vsub.f32 1.0, %v2146_v40  ;;  %vm2165_vm15 = vweird.f32 %v1960_v13 }
 0x3fa   : > { %v2172_v10 = vor.u32 1.1754944e-38, %v2171_v33  ;;  %vm2170_vm1 = vcmp.eq.f32.partialorder %v2169_v39, 8.507059e+37 }
 0x3fb   : > { %2216 = vst [vmem:[%s3602_s15 + $0x58] sm:$0xff] %v2144_v12  ;;  %v2148_v34 = vmul.f32 %v2672_v17, %v2147_v60 }
 0x3fd   : > { %v2149_v11 = vadd.f32 %v2672_v17, %v2148_v34 }
 0x3fe   : > { %v2674_v49 = vpop.eup %2673 }
 0x3ff   : > { %v2153_v41 = vsel %vm2152_vm12, %v2672_v17, %v2149_v11  ;;  %v2161_v55 = vmul.f32 %v2674_v49, %v1960_v13  ;;  %v1962_v54 = vpop.xlane.xlu0 %1961  ;;  %vm2166_vm14 = vweird.f32 %v2674_v49 }
 0x400   : > { %v2158_v59 = vsel %vm2155_vm13, %v2157_v50, %v2153_v41  ;;  %2675 = vrcp.f32 %v1962_v54  ;;  %vm2167_vm0 = vmor %vm2165_vm15, %vm2166_vm14  ;;  %v2186_v2 = vand.u32 2147483648, %v1962_v54  ;;  %v2184_v7 = vand.u32 2147483647, %v1962_v54 }
 0x401   : > { %v2159_v61 = vmul.f32 %v3584_v27, %v2158_v59  ;;  %v2162_v28 = vsub.f32 1.0, %v2161_v55  ;;  %vm2180_vm3 = vweird.f32 %v1962_v54 }
 0x402   : > { %v2187_v5 = vor.u32 1.1754944e-38, %v2186_v2  ;;  %vm2185_vm6 = vcmp.eq.f32.partialorder %v2184_v7, 8.507059e+37 }
 0x403   : > { %2217 = vst [vmem:[%s3602_s15 + $0x60] sm:$0xff] %v2159_v61  ;;  %v2163_v56 = vmul.f32 %v2674_v49, %v2162_v28 }
 0x405   : > { %v2164_v57 = vadd.f32 %v2674_v49, %v2163_v56 }
 0x406   : > { %v2676_v18 = vpop.eup %2675 }
 0x407   : > { %v2168_v46 = vsel %vm2167_vm0, %v2674_v49, %v2164_v57  ;;  %v2176_v6 = vmul.f32 %v2676_v18, %v1962_v54  ;;  %v1964_v25 = vpop.xlane.xlu1 %1963  ;;  %vm2181_vm2 = vweird.f32 %v2676_v18 }
 0x408   : > { %v2173_v51 = vsel %vm2170_vm1, %v2172_v10, %v2168_v46  ;;  %2677 = vrcp.f32 %v1964_v25  ;;  %vm2182_vm4 = vmor %vm2180_vm3, %vm2181_vm2  ;;  %v2201_v3 = vand.u32 2147483648, %v1964_v25  ;;  %v2199_v47 = vand.u32 2147483647, %v1964_v25 }
 0x409   : > { %v2174_v27 = vmul.f32 %v3588_v37, %v2173_v51  ;;  %v2177_v14 = vsub.f32 1.0, %v2176_v6  ;;  %vm2195_vm8 = vweird.f32 %v1964_v25 }
 0x40a   : > { %v2202_v62 = vor.u32 1.1754944e-38, %v2201_v3  ;;  %vm2200_vm10 = vcmp.eq.f32.partialorder %v2199_v47, 8.507059e+37 }
 0x40b   : > { %2218 = vst [vmem:[%s3602_s15 + $0x68] sm:$0xff] %v2174_v27  ;;  %v2178_v63 = vmul.f32 %v2676_v18, %v2177_v14 }
 0x40d   : > { %v2179_v9 = vadd.f32 %v2676_v18, %v2178_v63 }
 0x40e   : > { %v2678_v43 = vpop.eup %2677 }
 0x40f   : > { %v2183_v42 = vsel %vm2182_vm4, %v2676_v18, %v2179_v9  ;;  %v2191_v30 = vmul.f32 %v2678_v43, %v1964_v25  ;;  %vm2196_vm7 = vweird.f32 %v2678_v43 }
 0x410   : > { %v2188_v52 = vsel %vm2185_vm6, %v2187_v5, %v2183_v42  ;;  %vm2197_vm9 = vmor %vm2195_vm8, %vm2196_vm7 }
 0x411   : > { %v2189_v37 = vmul.f32 %v3592_v24, %v2188_v52  ;;  %v2192_v15 = vsub.f32 1.0, %v2191_v30 }
 0x413   : > { %2219 = vst [vmem:[%s3602_s15 + $0x70] sm:$0xff] %v2189_v37  ;;  %v2193_v38 = vmul.f32 %v2678_v43, %v2192_v15 }
 0x415   : > { %v2194_v45 = vadd.f32 %v2678_v43, %v2193_v38 }
 0x417   : > { %v2198_v24 = vsel %vm2197_vm9, %v2678_v43, %v2194_v45 }
 0x418   : > { %v2203_v8 = vsel %vm2200_vm10, %v2202_v62, %v2198_v24 }
 0x419   : > { %v2204_v20 = vmul.f32 %v3595_v31, %v2203_v8 }
 0x41b   : > { %2220 = vst [vmem:[%s3602_s15 + $0x78] sm:$0xff] %v2204_v20 }
 0x41c   : > { %2706 = shalt.err (!%p2703_p3)
}
 0x41d   : > { %s2743_s9 = smov 128   ;;  %s2744_s15 = smov 8  }
 0x41e   : > { %2443 = dma.vmem_to_hbm [thread:$0]  (%p2823_p5), %s2235_s13, 2048, %s2237_s28, %s2222_s20, %s2743_s9, %s2743_s9, %s2744_s15  }
 0x41f PF: > { %p2449_p4 = scmp.ge.s32.totalorder %s2741_s27, 2  ;;  %s2251_s17 = sand.u32 1, %s2729_s24  }
 0x420   : > { %s2252_s18 = scalar_lea.sflag [#allocation3], %s2251_s17 }
 0x421   : > { %p2446_p7 = pnand %p2449_p4, %p2827_p6 }
 0x423   : > { %p2447_p8 = pneg %p2446_p7 }
 0x425   : > { %2724 = dma.done.wait (%p2447_p8), %s2252_s18, 2048  }
 0x426   : > { %2726 = vsyncadd (%p2447_p8), %s2252_s18, 4294965248  ;;  %p17_p9 = scmp.ge.s32.totalorder %s2810_s30, 4   ;;  %s3679_s24 = smov %s2733_s25 }
 0x427   : > { %s3680_s25 = smov %s2737_s26  ;;  %s3681_s26 = smov %s2821_s10 }
 0x428   : > { %s3682_s27 = smov %s2810_s30  ;;  %19 = sbr.rel (!%p17_p9) target bundleno = 3 (0x3), region = 83 }
 0x42d   :  { %2258 = vsyncpa [#allocation3], 1 }
 0x42e   :  { %2260 = vsyncpa [#allocation3 + $0x1], 1 }

</bundles_post_ra>
